<compile_context>
chip_gen: v7x
topology: tpu7x:2x2x1
jax: 0.10.0
libtpu: 0.0.40
codegen_flags: <defaults>
</compile_context>

<pallas_src>
import functools

import jax
import jax.numpy as jnp
import numpy as np
from jax import lax
from jax.experimental import pallas as pl
from jax.experimental.pallas import tpu as pltpu


def _conv_sig_kernel(x_ref, w_ref, b_ref, o_ref, y_ref, *, cin, cout, k, wp, ho, wo):
    """Fused KxK conv (stride 1) + bias + sigmoid for ONE image.

    x_ref : (1, cin, Lp)       flattened zero-padded image, row-major h*wp + w (VMEM)
    w_ref : (k*k, cout, cin)   per-tap weight matrices (resident)
    b_ref : (cout, 1)          bias (resident)
    o_ref : (1, cout, ho, wo)  NCHW output block for this image
    y_ref : (cout, ho*wp)      VMEM scratch holding the activated flat result
    """
    L = ho * wp  # flat pixel count, including (wp - wo) junk columns per row

    # 9 tap-accumulating GEMMs.  Every tap is a contiguous lane-dim slice of the
    # flat image, so no in-kernel reshapes/relayouts are needed.  MXU fill is low
    # (K = cin per dot) but the kernel is HBM-bound, so that is fine.
    acc = jnp.zeros((cout, L), jnp.float32)
    for kh in range(k):
        for kw in range(k):
            xs = x_ref[0, :, pl.ds(kh * wp + kw, L)]                    # (cin, L)
            acc = acc + jnp.dot(w_ref[kh * k + kw], xs,
                                preferred_element_type=jnp.float32)     # (cout, L)
    acc = acc + b_ref[...]                                              # bias

    # sigmoid(x) = 1 / (1 + exp(-x)).  exp and the approximate reciprocal run on
    # the EUP slot; one Newton refinement (3 cheap VPU ops) restores ~f32 accuracy.
    d = 1.0 + jnp.exp(-acc)
    r = pl.reciprocal(d, approx=True)
    r = r * (2.0 - d * r)
    y_ref[...] = r

    # Store only the wo valid columns of each output row (drop the junk columns).
    # TODO(synk): for very tall images (Ho in the hundreds+) switch this static
    # unroll to lax.fori_loop + a row-blocked grid with manual halo DMA to bound
    # both compile time and per-step VMEM.
    for h in range(ho):
        o_ref[0, :, h, :] = y_ref[:, h * wp:h * wp + wo].astype(o_ref.dtype)


def basic_block_sig(x_nchw, weight_oihw, bias, *, stride=1, pad=1):
    """Equivalent of BasicBlockSig.forward: sigmoid(conv2d(x)).

    x_nchw      : (N, Cin, H, W)     -- PyTorch NCHW convention
    weight_oihw : (Cout, Cin, K, K)  -- PyTorch conv weight layout
    bias        : (Cout,)
    returns     : (N, Cout, Ho, Wo) in NCHW
    """
    assert stride == 1, "kernel implements the module's default stride=1"
    N, Cin, H, W = x_nchw.shape
    Cout, Cin_w, K, K2 = weight_oihw.shape
    assert Cin == Cin_w and K == K2

    Ho = H + 2 * pad - K + 1
    Wo = W + 2 * pad - K + 1
    Hp = H + 2 * pad            # = Ho + K - 1
    Wp = W + 2 * pad
    assert Wp >= K - 1

    # Single wrapper pass over the activations: spatial zero-pad.  One extra
    # bottom row keeps the last flat tap slice in bounds (and reads zeros into
    # the discarded junk columns).  The flatten to (N, Cin, Lp) is free (contiguous).
    x_pad = jnp.pad(x_nchw, ((0, 0), (0, 0), (pad, pad + 1), (pad, pad)))
    Lp = (Hp + 1) * Wp
    x_flat = x_pad.reshape(N, Cin, Lp)

    # Per-tap weight matrices: (Cout,Cin,K,K) -> (K,K,Cout,Cin) -> (K*K,Cout,Cin).
    # ~1 KiB, stays resident in VMEM for the whole grid.
    w_taps = jnp.transpose(weight_oihw, (2, 3, 0, 1)).reshape(K * K, Cout, Cin)
    w_taps = w_taps.astype(x_nchw.dtype)
    b2d = bias.astype(jnp.float32).reshape(Cout, 1)

    kernel = functools.partial(_conv_sig_kernel, cin=Cin, cout=Cout, k=K,
                               wp=Wp, ho=Ho, wo=Wo)

    out = pl.pallas_call(
        kernel,
        out_shape=jax.ShapeDtypeStruct((N, Cout, Ho, Wo), x_nchw.dtype),
        grid=(N,),
        in_specs=[
            pl.BlockSpec((1, Cin, Lp), lambda n: (n, 0, 0)),        # one image per step
            pl.BlockSpec((K * K, Cout, Cin), lambda n: (0, 0, 0)),  # resident weights
            pl.BlockSpec((Cout, 1), lambda n: (0, 0)),              # resident bias
        ],
        out_specs=pl.BlockSpec((1, Cout, Ho, Wo), lambda n: (n, 0, 0, 0)),
        scratch_shapes=[pltpu.VMEM((Cout, Ho * Wp), jnp.float32)],
        compiler_params=pltpu.CompilerParams(
            # One image per grid step; images are independent -> the v7x dual
            # TensorCores split the batch evenly (N kept even by the caller).
            dimension_semantics=("parallel",),
            vmem_limit_bytes=32 * 1024 * 1024,
        ),
    )(x_flat, w_taps, b2d)
    return out


def _reference(x_nchw, weight_oihw, bias, *, stride=1, pad=1):
    """Pure-JAX reference (matches torch.nn.Conv2d + Sigmoid)."""
    y = lax.conv_general_dilated(
        x_nchw, weight_oihw,
        window_strides=(stride, stride),
        padding=[(pad, pad), (pad, pad)],
        dimension_numbers=("NCHW", "OIHW", "NCHW"))
    y = y + bias.reshape(1, -1, 1, 1)
    return jax.nn.sigmoid(y)


if __name__ == "__main__":
    # Small deterministic setup: BasicBlockSig(in_channels=4, out_channels=8)
    N, Cin, H, W = 2, 4, 16, 16
    Cout, K, stride, pad = 8, 3, 1, 1

    key = jax.random.PRNGKey(0)
    k_x, k_w, k_b = jax.random.split(key, 3)
    x = jax.random.normal(k_x, (N, Cin, H, W), dtype=jnp.float32)
    # Deterministic synthetic init for the conv parameters (no checkpoint).
    weight = jax.random.normal(k_w, (Cout, Cin, K, K), dtype=jnp.float32) * 0.1
    bias = jax.random.normal(k_b, (Cout,), dtype=jnp.float32) * 0.05

    out = jax.block_until_ready(basic_block_sig(x, weight, bias, stride=stride, pad=pad))
    ref = jax.block_until_ready(_reference(x, weight, bias, stride=stride, pad=pad))

    # Tolerance accounts for the EUP approximate reciprocal + one Newton step.
    np.testing.assert_allclose(np.asarray(out), np.asarray(ref), atol=1e-4, rtol=1e-4)

    print("KERNEL_OK")
</pallas_src>

<mosaic_0001>
module attributes {stable_mosaic.version = 11 : i64} {
  func.func @_conv_sig_kernel(%arg0: i32, %arg1: memref<1x4x342xf32, #tpu.memory_space<vmem>>, %arg2: memref<9x8x4xf32, #tpu.memory_space<vmem>>, %arg3: memref<8x1xf32, #tpu.memory_space<vmem>>, %arg4: memref<1x8x16x16xf32, #tpu.memory_space<vmem>>, %arg5: memref<8x288xf32, #tpu.memory_space<vmem>>) attributes {dimension_semantics = [#tpu.dimension_semantics<parallel>], iteration_bounds = array<i64: 2>, scalar_prefetch = 0 : i64, scratch_operands = 1 : i64, tpu.core_type = #tpu.core_type<tc>, window_params = [{transform_indices = @transform_0, window_bounds = array<i64: 1, 4, 342>}, {pipeline_mode = #tpu.pipeline_mode<synchronous>, transform_indices = @transform_1, window_bounds = array<i64: 9, 8, 4>}, {pipeline_mode = #tpu.pipeline_mode<synchronous>, transform_indices = @transform_2, window_bounds = array<i64: 8, 1>}, {transform_indices = @transform_3, window_bounds = array<i64: 1, 8, 16, 16>}]} {
    %cst = arith.constant 0.000000e+00 : f32
    %0 = vector.broadcast %cst : f32 to vector<8x288xf32>
    %c0 = arith.constant 0 : index
    %c0_0 = arith.constant 0 : index
    %c0_1 = arith.constant 0 : index
    %1 = vector.load %arg1[%c0, %c0_0, %c0_1] : memref<1x4x342xf32, #tpu.memory_space<vmem>>, vector<1x4x288xf32>
    %2 = vector.shape_cast %1 : vector<1x4x288xf32> to vector<4x288xf32>
    %c0_2 = arith.constant 0 : index
    %c0_3 = arith.constant 0 : index
    %c0_4 = arith.constant 0 : index
    %3 = vector.load %arg2[%c0_2, %c0_3, %c0_4] : memref<9x8x4xf32, #tpu.memory_space<vmem>>, vector<1x8x4xf32>
    %4 = vector.shape_cast %3 : vector<1x8x4xf32> to vector<8x4xf32>
    %cst_5 = arith.constant dense<0.000000e+00> : vector<8x288xf32>
    %5 = tpu.matmul %4, %2, %cst_5 {dimension_numbers = #tpu.dot_dimension_numbers<[1], [0], [0], [1], [0, 0, 1, 1], [], []>} : vector<8x4xf32>, vector<4x288xf32>, vector<8x288xf32> -> vector<8x288xf32>
    %6 = arith.addf %0, %5 : vector<8x288xf32>
    %c0_6 = arith.constant 0 : index
    %c0_7 = arith.constant 0 : index
    %c1 = arith.constant 1 : index
    %7 = vector.load %arg1[%c0_6, %c0_7, %c1] : memref<1x4x342xf32, #tpu.memory_space<vmem>>, vector<1x4x288xf32>
    %8 = vector.shape_cast %7 : vector<1x4x288xf32> to vector<4x288xf32>
    %c1_8 = arith.constant 1 : index
    %c0_9 = arith.constant 0 : index
    %c0_10 = arith.constant 0 : index
    %9 = vector.load %arg2[%c1_8, %c0_9, %c0_10] : memref<9x8x4xf32, #tpu.memory_space<vmem>>, vector<1x8x4xf32>
    %10 = vector.shape_cast %9 : vector<1x8x4xf32> to vector<8x4xf32>
    %cst_11 = arith.constant dense<0.000000e+00> : vector<8x288xf32>
    %11 = tpu.matmul %10, %8, %cst_11 {dimension_numbers = #tpu.dot_dimension_numbers<[1], [0], [0], [1], [0, 0, 1, 1], [], []>} : vector<8x4xf32>, vector<4x288xf32>, vector<8x288xf32> -> vector<8x288xf32>
    %12 = arith.addf %6, %11 : vector<8x288xf32>
    %c0_12 = arith.constant 0 : index
    %c0_13 = arith.constant 0 : index
    %c2 = arith.constant 2 : index
    %13 = vector.load %arg1[%c0_12, %c0_13, %c2] : memref<1x4x342xf32, #tpu.memory_space<vmem>>, vector<1x4x288xf32>
    %14 = vector.shape_cast %13 : vector<1x4x288xf32> to vector<4x288xf32>
    %c2_14 = arith.constant 2 : index
    %c0_15 = arith.constant 0 : index
    %c0_16 = arith.constant 0 : index
    %15 = vector.load %arg2[%c2_14, %c0_15, %c0_16] : memref<9x8x4xf32, #tpu.memory_space<vmem>>, vector<1x8x4xf32>
    %16 = vector.shape_cast %15 : vector<1x8x4xf32> to vector<8x4xf32>
    %cst_17 = arith.constant dense<0.000000e+00> : vector<8x288xf32>
    %17 = tpu.matmul %16, %14, %cst_17 {dimension_numbers = #tpu.dot_dimension_numbers<[1], [0], [0], [1], [0, 0, 1, 1], [], []>} : vector<8x4xf32>, vector<4x288xf32>, vector<8x288xf32> -> vector<8x288xf32>
    %18 = arith.addf %12, %17 : vector<8x288xf32>
    %c0_18 = arith.constant 0 : index
    %c0_19 = arith.constant 0 : index
    %c18 = arith.constant 18 : index
    %19 = vector.load %arg1[%c0_18, %c0_19, %c18] : memref<1x4x342xf32, #tpu.memory_space<vmem>>, vector<1x4x288xf32>
    %20 = vector.shape_cast %19 : vector<1x4x288xf32> to vector<4x288xf32>
    %c3 = arith.constant 3 : index
    %c0_20 = arith.constant 0 : index
    %c0_21 = arith.constant 0 : index
    %21 = vector.load %arg2[%c3, %c0_20, %c0_21] : memref<9x8x4xf32, #tpu.memory_space<vmem>>, vector<1x8x4xf32>
    %22 = vector.shape_cast %21 : vector<1x8x4xf32> to vector<8x4xf32>
    %cst_22 = arith.constant dense<0.000000e+00> : vector<8x288xf32>
    %23 = tpu.matmul %22, %20, %cst_22 {dimension_numbers = #tpu.dot_dimension_numbers<[1], [0], [0], [1], [0, 0, 1, 1], [], []>} : vector<8x4xf32>, vector<4x288xf32>, vector<8x288xf32> -> vector<8x288xf32>
    %24 = arith.addf %18, %23 : vector<8x288xf32>
    %c0_23 = arith.constant 0 : index
    %c0_24 = arith.constant 0 : index
    %c19 = arith.constant 19 : index
    %25 = vector.load %arg1[%c0_23, %c0_24, %c19] : memref<1x4x342xf32, #tpu.memory_space<vmem>>, vector<1x4x288xf32>
    %26 = vector.shape_cast %25 : vector<1x4x288xf32> to vector<4x288xf32>
    %c4 = arith.constant 4 : index
    %c0_25 = arith.constant 0 : index
    %c0_26 = arith.constant 0 : index
    %27 = vector.load %arg2[%c4, %c0_25, %c0_26] : memref<9x8x4xf32, #tpu.memory_space<vmem>>, vector<1x8x4xf32>
    %28 = vector.shape_cast %27 : vector<1x8x4xf32> to vector<8x4xf32>
    %cst_27 = arith.constant dense<0.000000e+00> : vector<8x288xf32>
    %29 = tpu.matmul %28, %26, %cst_27 {dimension_numbers = #tpu.dot_dimension_numbers<[1], [0], [0], [1], [0, 0, 1, 1], [], []>} : vector<8x4xf32>, vector<4x288xf32>, vector<8x288xf32> -> vector<8x288xf32>
    %30 = arith.addf %24, %29 : vector<8x288xf32>
    %c0_28 = arith.constant 0 : index
    %c0_29 = arith.constant 0 : index
    %c20 = arith.constant 20 : index
    %31 = vector.load %arg1[%c0_28, %c0_29, %c20] : memref<1x4x342xf32, #tpu.memory_space<vmem>>, vector<1x4x288xf32>
    %32 = vector.shape_cast %31 : vector<1x4x288xf32> to vector<4x288xf32>
    %c5 = arith.constant 5 : index
    %c0_30 = arith.constant 0 : index
    %c0_31 = arith.constant 0 : index
    %33 = vector.load %arg2[%c5, %c0_30, %c0_31] : memref<9x8x4xf32, #tpu.memory_space<vmem>>, vector<1x8x4xf32>
    %34 = vector.shape_cast %33 : vector<1x8x4xf32> to vector<8x4xf32>
    %cst_32 = arith.constant dense<0.000000e+00> : vector<8x288xf32>
    %35 = tpu.matmul %34, %32, %cst_32 {dimension_numbers = #tpu.dot_dimension_numbers<[1], [0], [0], [1], [0, 0, 1, 1], [], []>} : vector<8x4xf32>, vector<4x288xf32>, vector<8x288xf32> -> vector<8x288xf32>
    %36 = arith.addf %30, %35 : vector<8x288xf32>
    %c0_33 = arith.constant 0 : index
    %c0_34 = arith.constant 0 : index
    %c36 = arith.constant 36 : index
    %37 = vector.load %arg1[%c0_33, %c0_34, %c36] : memref<1x4x342xf32, #tpu.memory_space<vmem>>, vector<1x4x288xf32>
    %38 = vector.shape_cast %37 : vector<1x4x288xf32> to vector<4x288xf32>
    %c6 = arith.constant 6 : index
    %c0_35 = arith.constant 0 : index
    %c0_36 = arith.constant 0 : index
    %39 = vector.load %arg2[%c6, %c0_35, %c0_36] : memref<9x8x4xf32, #tpu.memory_space<vmem>>, vector<1x8x4xf32>
    %40 = vector.shape_cast %39 : vector<1x8x4xf32> to vector<8x4xf32>
    %cst_37 = arith.constant dense<0.000000e+00> : vector<8x288xf32>
    %41 = tpu.matmul %40, %38, %cst_37 {dimension_numbers = #tpu.dot_dimension_numbers<[1], [0], [0], [1], [0, 0, 1, 1], [], []>} : vector<8x4xf32>, vector<4x288xf32>, vector<8x288xf32> -> vector<8x288xf32>
    %42 = arith.addf %36, %41 : vector<8x288xf32>
    %c0_38 = arith.constant 0 : index
    %c0_39 = arith.constant 0 : index
    %c37 = arith.constant 37 : index
    %43 = vector.load %arg1[%c0_38, %c0_39, %c37] : memref<1x4x342xf32, #tpu.memory_space<vmem>>, vector<1x4x288xf32>
    %44 = vector.shape_cast %43 : vector<1x4x288xf32> to vector<4x288xf32>
    %c7 = arith.constant 7 : index
    %c0_40 = arith.constant 0 : index
    %c0_41 = arith.constant 0 : index
    %45 = vector.load %arg2[%c7, %c0_40, %c0_41] : memref<9x8x4xf32, #tpu.memory_space<vmem>>, vector<1x8x4xf32>
    %46 = vector.shape_cast %45 : vector<1x8x4xf32> to vector<8x4xf32>
    %cst_42 = arith.constant dense<0.000000e+00> : vector<8x288xf32>
    %47 = tpu.matmul %46, %44, %cst_42 {dimension_numbers = #tpu.dot_dimension_numbers<[1], [0], [0], [1], [0, 0, 1, 1], [], []>} : vector<8x4xf32>, vector<4x288xf32>, vector<8x288xf32> -> vector<8x288xf32>
    %48 = arith.addf %42, %47 : vector<8x288xf32>
    %c0_43 = arith.constant 0 : index
    %c0_44 = arith.constant 0 : index
    %c38 = arith.constant 38 : index
    %49 = vector.load %arg1[%c0_43, %c0_44, %c38] : memref<1x4x342xf32, #tpu.memory_space<vmem>>, vector<1x4x288xf32>
    %50 = vector.shape_cast %49 : vector<1x4x288xf32> to vector<4x288xf32>
    %c8 = arith.constant 8 : index
    %c0_45 = arith.constant 0 : index
    %c0_46 = arith.constant 0 : index
    %51 = vector.load %arg2[%c8, %c0_45, %c0_46] : memref<9x8x4xf32, #tpu.memory_space<vmem>>, vector<1x8x4xf32>
    %52 = vector.shape_cast %51 : vector<1x8x4xf32> to vector<8x4xf32>
    %cst_47 = arith.constant dense<0.000000e+00> : vector<8x288xf32>
    %53 = tpu.matmul %52, %50, %cst_47 {dimension_numbers = #tpu.dot_dimension_numbers<[1], [0], [0], [1], [0, 0, 1, 1], [], []>} : vector<8x4xf32>, vector<4x288xf32>, vector<8x288xf32> -> vector<8x288xf32>
    %54 = arith.addf %48, %53 : vector<8x288xf32>
    %c0_48 = arith.constant 0 : index
    %c0_49 = arith.constant 0 : index
    %55 = vector.load %arg3[%c0_48, %c0_49] : memref<8x1xf32, #tpu.memory_space<vmem>>, vector<8x1xf32>
    %56 = vector.broadcast %55 : vector<8x1xf32> to vector<8x288xf32>
    %57 = arith.addf %54, %56 : vector<8x288xf32>
    %cst_50 = arith.constant 0.000000e+00 : f32
    %58 = vector.broadcast %cst_50 : f32 to vector<8x288xf32>
    %59 = arith.subf %58, %57 : vector<8x288xf32>
    %60 = math.exp %59 : vector<8x288xf32>
    %cst_51 = arith.constant 1.000000e+00 : f32
    %61 = vector.broadcast %cst_51 : f32 to vector<8x288xf32>
    %62 = arith.addf %61, %60 : vector<8x288xf32>
    %63 = tpu.reciprocal %62 {approx = true} : vector<8x288xf32> -> vector<8x288xf32>
    %64 = arith.mulf %62, %63 : vector<8x288xf32>
    %cst_52 = arith.constant 2.000000e+00 : f32
    %65 = vector.broadcast %cst_52 : f32 to vector<8x288xf32>
    %66 = arith.subf %65, %64 : vector<8x288xf32>
    %67 = arith.mulf %63, %66 : vector<8x288xf32>
    %c0_53 = arith.constant 0 : index
    %c0_54 = arith.constant 0 : index
    %68 = vector.load %arg5[%c0_53, %c0_54] : memref<8x288xf32, #tpu.memory_space<vmem>>, vector<8x288xf32>
    tpu.vector_store %arg5[%c0_53, %c0_54], %67 {strides = array<i32>} : memref<8x288xf32, #tpu.memory_space<vmem>>, vector<8x288xf32>,
    %c0_55 = arith.constant 0 : index
    %c0_56 = arith.constant 0 : index
    %69 = vector.load %arg5[%c0_55, %c0_56] : memref<8x288xf32, #tpu.memory_space<vmem>>, vector<8x16xf32>
    %c0_57 = arith.constant 0 : index
    %c0_58 = arith.constant 0 : index
    %c0_59 = arith.constant 0 : index
    %c0_60 = arith.constant 0 : index
    %70 = vector.load %arg4[%c0_57, %c0_58, %c0_59, %c0_60] : memref<1x8x16x16xf32, #tpu.memory_space<vmem>>, vector<1x8x1x16xf32>
    %71 = vector.shape_cast %70 : vector<1x8x1x16xf32> to vector<8x16xf32>
    %72 = vector.shape_cast %69 : vector<8x16xf32> to vector<1x8x1x16xf32>
    tpu.vector_store %arg4[%c0_57, %c0_58, %c0_59, %c0_60], %72 {strides = array<i32>} : memref<1x8x16x16xf32, #tpu.memory_space<vmem>>, vector<1x8x1x16xf32>,
    %c0_61 = arith.constant 0 : index
    %c18_62 = arith.constant 18 : index
    %73 = vector.load %arg5[%c0_61, %c18_62] : memref<8x288xf32, #tpu.memory_space<vmem>>, vector<8x16xf32>
    %c0_63 = arith.constant 0 : index
    %c0_64 = arith.constant 0 : index
    %c1_65 = arith.constant 1 : index
    %c0_66 = arith.constant 0 : index
    %74 = vector.load %arg4[%c0_63, %c0_64, %c1_65, %c0_66] : memref<1x8x16x16xf32, #tpu.memory_space<vmem>>, vector<1x8x1x16xf32>
    %75 = vector.shape_cast %74 : vector<1x8x1x16xf32> to vector<8x16xf32>
    %76 = vector.shape_cast %73 : vector<8x16xf32> to vector<1x8x1x16xf32>
    tpu.vector_store %arg4[%c0_63, %c0_64, %c1_65, %c0_66], %76 {strides = array<i32>} : memref<1x8x16x16xf32, #tpu.memory_space<vmem>>, vector<1x8x1x16xf32>,
    %c0_67 = arith.constant 0 : index
    %c36_68 = arith.constant 36 : index
    %77 = vector.load %arg5[%c0_67, %c36_68] : memref<8x288xf32, #tpu.memory_space<vmem>>, vector<8x16xf32>
    %c0_69 = arith.constant 0 : index
    %c0_70 = arith.constant 0 : index
    %c2_71 = arith.constant 2 : index
    %c0_72 = arith.constant 0 : index
    %78 = vector.load %arg4[%c0_69, %c0_70, %c2_71, %c0_72] : memref<1x8x16x16xf32, #tpu.memory_space<vmem>>, vector<1x8x1x16xf32>
    %79 = vector.shape_cast %78 : vector<1x8x1x16xf32> to vector<8x16xf32>
    %80 = vector.shape_cast %77 : vector<8x16xf32> to vector<1x8x1x16xf32>
    tpu.vector_store %arg4[%c0_69, %c0_70, %c2_71, %c0_72], %80 {strides = array<i32>} : memref<1x8x16x16xf32, #tpu.memory_space<vmem>>, vector<1x8x1x16xf32>,
    %c0_73 = arith.constant 0 : index
    %c54 = arith.constant 54 : index
    %81 = vector.load %arg5[%c0_73, %c54] : memref<8x288xf32, #tpu.memory_space<vmem>>, vector<8x16xf32>
    %c0_74 = arith.constant 0 : index
    %c0_75 = arith.constant 0 : index
    %c3_76 = arith.constant 3 : index
    %c0_77 = arith.constant 0 : index
    %82 = vector.load %arg4[%c0_74, %c0_75, %c3_76, %c0_77] : memref<1x8x16x16xf32, #tpu.memory_space<vmem>>, vector<1x8x1x16xf32>
    %83 = vector.shape_cast %82 : vector<1x8x1x16xf32> to vector<8x16xf32>
    %84 = vector.shape_cast %81 : vector<8x16xf32> to vector<1x8x1x16xf32>
    tpu.vector_store %arg4[%c0_74, %c0_75, %c3_76, %c0_77], %84 {strides = array<i32>} : memref<1x8x16x16xf32, #tpu.memory_space<vmem>>, vector<1x8x1x16xf32>,
    %c0_78 = arith.constant 0 : index
    %c72 = arith.constant 72 : index
    %85 = vector.load %arg5[%c0_78, %c72] : memref<8x288xf32, #tpu.memory_space<vmem>>, vector<8x16xf32>
    %c0_79 = arith.constant 0 : index
    %c0_80 = arith.constant 0 : index
    %c4_81 = arith.constant 4 : index
    %c0_82 = arith.constant 0 : index
    %86 = vector.load %arg4[%c0_79, %c0_80, %c4_81, %c0_82] : memref<1x8x16x16xf32, #tpu.memory_space<vmem>>, vector<1x8x1x16xf32>
    %87 = vector.shape_cast %86 : vector<1x8x1x16xf32> to vector<8x16xf32>
    %88 = vector.shape_cast %85 : vector<8x16xf32> to vector<1x8x1x16xf32>
    tpu.vector_store %arg4[%c0_79, %c0_80, %c4_81, %c0_82], %88 {strides = array<i32>} : memref<1x8x16x16xf32, #tpu.memory_space<vmem>>, vector<1x8x1x16xf32>,
    %c0_83 = arith.constant 0 : index
    %c90 = arith.constant 90 : index
    %89 = vector.load %arg5[%c0_83, %c90] : memref<8x288xf32, #tpu.memory_space<vmem>>, vector<8x16xf32>
    %c0_84 = arith.constant 0 : index
    %c0_85 = arith.constant 0 : index
    %c5_86 = arith.constant 5 : index
    %c0_87 = arith.constant 0 : index
    %90 = vector.load %arg4[%c0_84, %c0_85, %c5_86, %c0_87] : memref<1x8x16x16xf32, #tpu.memory_space<vmem>>, vector<1x8x1x16xf32>
    %91 = vector.shape_cast %90 : vector<1x8x1x16xf32> to vector<8x16xf32>
    %92 = vector.shape_cast %89 : vector<8x16xf32> to vector<1x8x1x16xf32>
    tpu.vector_store %arg4[%c0_84, %c0_85, %c5_86, %c0_87], %92 {strides = array<i32>} : memref<1x8x16x16xf32, #tpu.memory_space<vmem>>, vector<1x8x1x16xf32>,
    %c0_88 = arith.constant 0 : index
    %c108 = arith.constant 108 : index
    %93 = vector.load %arg5[%c0_88, %c108] : memref<8x288xf32, #tpu.memory_space<vmem>>, vector<8x16xf32>
    %c0_89 = arith.constant 0 : index
    %c0_90 = arith.constant 0 : index
    %c6_91 = arith.constant 6 : index
    %c0_92 = arith.constant 0 : index
    %94 = vector.load %arg4[%c0_89, %c0_90, %c6_91, %c0_92] : memref<1x8x16x16xf32, #tpu.memory_space<vmem>>, vector<1x8x1x16xf32>
    %95 = vector.shape_cast %94 : vector<1x8x1x16xf32> to vector<8x16xf32>
    %96 = vector.shape_cast %93 : vector<8x16xf32> to vector<1x8x1x16xf32>
    tpu.vector_store %arg4[%c0_89, %c0_90, %c6_91, %c0_92], %96 {strides = array<i32>} : memref<1x8x16x16xf32, #tpu.memory_space<vmem>>, vector<1x8x1x16xf32>,
    %c0_93 = arith.constant 0 : index
    %c126 = arith.constant 126 : index
    %97 = vector.load %arg5[%c0_93, %c126] : memref<8x288xf32, #tpu.memory_space<vmem>>, vector<8x16xf32>
    %c0_94 = arith.constant 0 : index
    %c0_95 = arith.constant 0 : index
    %c7_96 = arith.constant 7 : index
    %c0_97 = arith.constant 0 : index
    %98 = vector.load %arg4[%c0_94, %c0_95, %c7_96, %c0_97] : memref<1x8x16x16xf32, #tpu.memory_space<vmem>>, vector<1x8x1x16xf32>
    %99 = vector.shape_cast %98 : vector<1x8x1x16xf32> to vector<8x16xf32>
    %100 = vector.shape_cast %97 : vector<8x16xf32> to vector<1x8x1x16xf32>
    tpu.vector_store %arg4[%c0_94, %c0_95, %c7_96, %c0_97], %100 {strides = array<i32>} : memref<1x8x16x16xf32, #tpu.memory_space<vmem>>, vector<1x8x1x16xf32>,
    %c0_98 = arith.constant 0 : index
    %c144 = arith.constant 144 : index
    %101 = vector.load %arg5[%c0_98, %c144] : memref<8x288xf32, #tpu.memory_space<vmem>>, vector<8x16xf32>
    %c0_99 = arith.constant 0 : index
    %c0_100 = arith.constant 0 : index
    %c8_101 = arith.constant 8 : index
    %c0_102 = arith.constant 0 : index
    %102 = vector.load %arg4[%c0_99, %c0_100, %c8_101, %c0_102] : memref<1x8x16x16xf32, #tpu.memory_space<vmem>>, vector<1x8x1x16xf32>
    %103 = vector.shape_cast %102 : vector<1x8x1x16xf32> to vector<8x16xf32>
    %104 = vector.shape_cast %101 : vector<8x16xf32> to vector<1x8x1x16xf32>
    tpu.vector_store %arg4[%c0_99, %c0_100, %c8_101, %c0_102], %104 {strides = array<i32>} : memref<1x8x16x16xf32, #tpu.memory_space<vmem>>, vector<1x8x1x16xf32>,
    %c0_103 = arith.constant 0 : index
    %c162 = arith.constant 162 : index
    %105 = vector.load %arg5[%c0_103, %c162] : memref<8x288xf32, #tpu.memory_space<vmem>>, vector<8x16xf32>
    %c0_104 = arith.constant 0 : index
    %c0_105 = arith.constant 0 : index
    %c9 = arith.constant 9 : index
    %c0_106 = arith.constant 0 : index
    %106 = vector.load %arg4[%c0_104, %c0_105, %c9, %c0_106] : memref<1x8x16x16xf32, #tpu.memory_space<vmem>>, vector<1x8x1x16xf32>
    %107 = vector.shape_cast %106 : vector<1x8x1x16xf32> to vector<8x16xf32>
    %108 = vector.shape_cast %105 : vector<8x16xf32> to vector<1x8x1x16xf32>
    tpu.vector_store %arg4[%c0_104, %c0_105, %c9, %c0_106], %108 {strides = array<i32>} : memref<1x8x16x16xf32, #tpu.memory_space<vmem>>, vector<1x8x1x16xf32>,
    %c0_107 = arith.constant 0 : index
    %c180 = arith.constant 180 : index
    %109 = vector.load %arg5[%c0_107, %c180] : memref<8x288xf32, #tpu.memory_space<vmem>>, vector<8x16xf32>
    %c0_108 = arith.constant 0 : index
    %c0_109 = arith.constant 0 : index
    %c10 = arith.constant 10 : index
    %c0_110 = arith.constant 0 : index
    %110 = vector.load %arg4[%c0_108, %c0_109, %c10, %c0_110] : memref<1x8x16x16xf32, #tpu.memory_space<vmem>>, vector<1x8x1x16xf32>
    %111 = vector.shape_cast %110 : vector<1x8x1x16xf32> to vector<8x16xf32>
    %112 = vector.shape_cast %109 : vector<8x16xf32> to vector<1x8x1x16xf32>
    tpu.vector_store %arg4[%c0_108, %c0_109, %c10, %c0_110], %112 {strides = array<i32>} : memref<1x8x16x16xf32, #tpu.memory_space<vmem>>, vector<1x8x1x16xf32>,
    %c0_111 = arith.constant 0 : index
    %c198 = arith.constant 198 : index
    %113 = vector.load %arg5[%c0_111, %c198] : memref<8x288xf32, #tpu.memory_space<vmem>>, vector<8x16xf32>
    %c0_112 = arith.constant 0 : index
    %c0_113 = arith.constant 0 : index
    %c11 = arith.constant 11 : index
    %c0_114 = arith.constant 0 : index
    %114 = vector.load %arg4[%c0_112, %c0_113, %c11, %c0_114] : memref<1x8x16x16xf32, #tpu.memory_space<vmem>>, vector<1x8x1x16xf32>
    %115 = vector.shape_cast %114 : vector<1x8x1x16xf32> to vector<8x16xf32>
    %116 = vector.shape_cast %113 : vector<8x16xf32> to vector<1x8x1x16xf32>
    tpu.vector_store %arg4[%c0_112, %c0_113, %c11, %c0_114], %116 {strides = array<i32>} : memref<1x8x16x16xf32, #tpu.memory_space<vmem>>, vector<1x8x1x16xf32>,
    %c0_115 = arith.constant 0 : index
    %c216 = arith.constant 216 : index
    %117 = vector.load %arg5[%c0_115, %c216] : memref<8x288xf32, #tpu.memory_space<vmem>>, vector<8x16xf32>
    %c0_116 = arith.constant 0 : index
    %c0_117 = arith.constant 0 : index
    %c12 = arith.constant 12 : index
    %c0_118 = arith.constant 0 : index
    %118 = vector.load %arg4[%c0_116, %c0_117, %c12, %c0_118] : memref<1x8x16x16xf32, #tpu.memory_space<vmem>>, vector<1x8x1x16xf32>
    %119 = vector.shape_cast %118 : vector<1x8x1x16xf32> to vector<8x16xf32>
    %120 = vector.shape_cast %117 : vector<8x16xf32> to vector<1x8x1x16xf32>
    tpu.vector_store %arg4[%c0_116, %c0_117, %c12, %c0_118], %120 {strides = array<i32>} : memref<1x8x16x16xf32, #tpu.memory_space<vmem>>, vector<1x8x1x16xf32>,
    %c0_119 = arith.constant 0 : index
    %c234 = arith.constant 234 : index
    %121 = vector.load %arg5[%c0_119, %c234] : memref<8x288xf32, #tpu.memory_space<vmem>>, vector<8x16xf32>
    %c0_120 = arith.constant 0 : index
    %c0_121 = arith.constant 0 : index
    %c13 = arith.constant 13 : index
    %c0_122 = arith.constant 0 : index
    %122 = vector.load %arg4[%c0_120, %c0_121, %c13, %c0_122] : memref<1x8x16x16xf32, #tpu.memory_space<vmem>>, vector<1x8x1x16xf32>
    %123 = vector.shape_cast %122 : vector<1x8x1x16xf32> to vector<8x16xf32>
    %124 = vector.shape_cast %121 : vector<8x16xf32> to vector<1x8x1x16xf32>
    tpu.vector_store %arg4[%c0_120, %c0_121, %c13, %c0_122], %124 {strides = array<i32>} : memref<1x8x16x16xf32, #tpu.memory_space<vmem>>, vector<1x8x1x16xf32>,
    %c0_123 = arith.constant 0 : index
    %c252 = arith.constant 252 : index
    %125 = vector.load %arg5[%c0_123, %c252] : memref<8x288xf32, #tpu.memory_space<vmem>>, vector<8x16xf32>
    %c0_124 = arith.constant 0 : index
    %c0_125 = arith.constant 0 : index
    %c14 = arith.constant 14 : index
    %c0_126 = arith.constant 0 : index
    %126 = vector.load %arg4[%c0_124, %c0_125, %c14, %c0_126] : memref<1x8x16x16xf32, #tpu.memory_space<vmem>>, vector<1x8x1x16xf32>
    %127 = vector.shape_cast %126 : vector<1x8x1x16xf32> to vector<8x16xf32>
    %128 = vector.shape_cast %125 : vector<8x16xf32> to vector<1x8x1x16xf32>
    tpu.vector_store %arg4[%c0_124, %c0_125, %c14, %c0_126], %128 {strides = array<i32>} : memref<1x8x16x16xf32, #tpu.memory_space<vmem>>, vector<1x8x1x16xf32>,
    %c0_127 = arith.constant 0 : index
    %c270 = arith.constant 270 : index
    %129 = vector.load %arg5[%c0_127, %c270] : memref<8x288xf32, #tpu.memory_space<vmem>>, vector<8x16xf32>
    %c0_128 = arith.constant 0 : index
    %c0_129 = arith.constant 0 : index
    %c15 = arith.constant 15 : index
    %c0_130 = arith.constant 0 : index
    %130 = vector.load %arg4[%c0_128, %c0_129, %c15, %c0_130] : memref<1x8x16x16xf32, #tpu.memory_space<vmem>>, vector<1x8x1x16xf32>
    %131 = vector.shape_cast %130 : vector<1x8x1x16xf32> to vector<8x16xf32>
    %132 = vector.shape_cast %129 : vector<8x16xf32> to vector<1x8x1x16xf32>
    tpu.vector_store %arg4[%c0_128, %c0_129, %c15, %c0_130], %132 {strides = array<i32>} : memref<1x8x16x16xf32, #tpu.memory_space<vmem>>, vector<1x8x1x16xf32>,
    return
  }
  func.func @transform_0(%arg0: i32) -> (i32, i32, i32) {
    %c0_i32 = arith.constant 0 : i32
    %c0_i32_0 = arith.constant 0 : i32
    %c0_i32_1 = arith.constant 0 : i32
    return %arg0, %c0_i32, %c0_i32_0 : i32, i32, i32
  }
  func.func @transform_1(%arg0: i32) -> (i32, i32, i32) {
    %c0_i32 = arith.constant 0 : i32
    %c0_i32_0 = arith.constant 0 : i32
    %c0_i32_1 = arith.constant 0 : i32
    %c0_i32_2 = arith.constant 0 : i32
    return %c0_i32, %c0_i32_0, %c0_i32_1 : i32, i32, i32
  }
  func.func @transform_2(%arg0: i32) -> (i32, i32) {
    %c0_i32 = arith.constant 0 : i32
    %c0_i32_0 = arith.constant 0 : i32
    %c0_i32_1 = arith.constant 0 : i32
    return %c0_i32, %c0_i32_0 : i32, i32
  }
  func.func @transform_3(%arg0: i32) -> (i32, i32, i32, i32) {
    %c0_i32 = arith.constant 0 : i32
    %c0_i32_0 = arith.constant 0 : i32
    %c0_i32_1 = arith.constant 0 : i32
    %c0_i32_2 = arith.constant 0 : i32
    return %arg0, %c0_i32, %c0_i32_0, %c0_i32_1 : i32, i32, i32, i32
  }
}

</mosaic_0001>

<bundles_post_ra>
// kernel: tpu_custom_call.1
= control target key start
LH: loop header
LB: loop body
LE: loop exit
PB: predicated region body
PF: predicated region fallthrough
CT: control target
= control target key end

     0   :  { %8 = vsyncpa [#allocation4], 0  ;;  %s5147_s0 = inlined_call_operand.vmem [shape: f32[2,4,342], index: 0, kind: input, shape index: {}]   ;;  %s5148_s1 = inlined_call_operand.vmem [shape: f32[9,8,4], index: 1, kind: input, shape index: {}]   ;;  %s5149_s2 = inlined_call_operand.vmem [shape: f32[8,1], index: 2, kind: input, shape index: {}]   ;;  %s5150_s3 = inlined_call_operand.hbm [shape: f32[2,8,16,16], index: 3, kind: output, shape index: {}]  }
   0x1   :  { %10 = vsyncpa [#allocation4 + $0x1], 0  ;;  %s4034_s12 = smov 0   ;;  %s4036_s13 = smov 0  }
   0x2   :  { %s4038_s14 = smov 0   ;;  %s4040_s15 = smov 0  }
   0x3 LB: > { %s4055_s16 = sadd.s32 4294967295, %s3984_s15   ;;  %s3696_s17 = sadd.s32 4294967294, %s3984_s15   ;;  %s3984_s15 = sphi %s4040_s15, %s5156_s15   ;;  %s3980_s14 = sphi %s4038_s14, %s5155_s14   ;;  %s3976_s13 = sphi %s4036_s13, %s5154_s13   ;;  %s3972_s12 = sphi %s4034_s12, %s5153_s12  }
   0x4   : > { %s4059_s18 = sadd.s32 1, %s3984_s15   ;;  %s91_s19 = sadd.s32 1, %s3980_s14 }
   0x5   : > { %s88_s20 = ssub.s32 %s3984_s15, %s4059_s18  ;;  %p101_p0 = scmp.ne.s32.totalorder %s3980_s14, %s3976_s13 }
   0x6   : > { %p89_p1 = scmp.eq.s32.totalorder %s88_s20, 0  ;;  %p102_p2 = scmp.eq.s32.totalorder %s4055_s16, 1 }
   0x7   : > { %p107_p3 = scmp.ne.s32.totalorder %s3976_s13, %s3972_s12  ;;  %p108_p4 = scmp.eq.s32.totalorder %s3696_s17, 1 }
   0x8   : > { %s4070_s21 = scalar_select %p89_p1, %s3980_s14, %s91_s19  }
   0x9   : > { %p4072_p5 = por %p102_p2, %p101_p0  ;;  %p4076_p6 = por %p108_p4, %p107_p3 }
   0xa   : > { %p3699_p7 = scmp.ge.s32.totalorder %s3984_s15, 1  ;;  %p140_p8 = scmp.lt.s32.totalorder %s3984_s15, 3 }
   0xc   : > { %p141_p9 = pnand %p3699_p7, %p140_p8 }
   0xd   : > { %p164_p10 = scmp.lt.s32.totalorder (!%p141_p9), %s4055_s16, 1  ;;  %v3986_v0 = vmov (!%p141_p9), 0.0   ;;  %vm3987_vm0 = vmmov (!%p141_p9), 0   ;;  %s3988_s29 = smov (!%p141_p9), 127   ;;  %v1671_v11 = vld [vmem:[%s5149_s2] sm:$0xff] (!%p141_p9)  ;;  %v3996_v12 = vmov (!%p141_p9), 0  }
   0xe   : > { %144 = sbr.rel (%p141_p9) target bundleno = 860 (0x35c), region = 32  ;;  %3779 = vmatprep.subr.mxu1 (!%p141_p9), %v3986_v0  ;;  %261 = vmatprep.mubr.f32.mxu0 (!%p141_p9), %v3986_v0  ;;  %s3989_s30 = smov (!%p141_p9), 126   ;;  %vm190_vm1 = vcmask (!%p141_p9), 1043456   ;;  %vm183_vm2 = vcmask (!%p141_p9), 1039360   ;;  %v3702_v16 = vld [vmem:[%s5148_s1 + $0x8] sm:$0xff] (!%p141_p9)  ;;  %vm186_vm3 = vcmask (!%p141_p9), 31744  }
   0xf   : > { %3781 = vmatprep.mubr.msk.f32.mxu1 (!%p141_p9), %vm3987_vm0, %v3986_v0  ;;  %s3990_s4 = smov (!%p141_p9), 110   ;;  %s3991_s5 = smov (!%p141_p9), 109   ;;  %3907 = vset.pattern.permute.xlu0 (!%p141_p9), %v3996_v12  ;;  %vm501_vm4 = vcmask (!%p141_p9), 1031168   ;;  %v171_v22 = vld [vmem:[%s5148_s1] sm:$0xff] (!%p141_p9)  ;;  %vm670_vm5 = vcmask (!%p141_p9), 900096   ;;  %v3713_v26 = vld [vmem:[%s5148_s1 + $0x10] sm:$0xff] (!%p141_p9) }
  0x10   : > { %s3992_s6 = smov (!%p141_p9), 108   ;;  %s3993_s7 = smov (!%p141_p9), 92   ;;  %v3719_v31 = vld [vmem:[%s5148_s1 + $0x18] sm:$0xff] (!%p141_p9)  ;;  %vm839_vm6 = vcmask (!%p141_p9), 891904   ;;  %v3725_v34 = vld [vmem:[%s5148_s1 + $0x20] sm:$0xff] (!%p141_p9)  ;;  %v3731_v39 = vld [vmem:[%s5148_s1 + $0x28] sm:$0xff] (!%p141_p9) }
  0x11   : > { %s3994_s8 = smov (!%p141_p9), 91   ;;  %s3995_s9 = smov (!%p141_p9), 90   ;;  %vm1008_vm7 = vcmask (!%p141_p9), 883712   ;;  %v3737_v43 = vld [vmem:[%s5148_s1 + $0x30] sm:$0xff] (!%p141_p9)  ;;  %v3743_v48 = vld [vmem:[%s5148_s1 + $0x38] sm:$0xff] (!%p141_p9)  ;;  %vm1177_vm8 = vcmask (!%p141_p9), 752640  }
  0x12   : > { %v3749_v53 = vld [vmem:[%s5148_s1 + $0x40] sm:$0xff] (!%p141_p9)  ;;  %vm1346_vm9 = vcmask (!%p141_p9), 744448   ;;  %vm1515_vm10 = vcmask (!%p141_p9), 736256   ;;  %vm1706_vm11 = vcmask (!%p141_p9), 261120   ;;  %s3998_s20 = smov (!%p141_p9), 114   ;;  %vm1767_vm12 = vcmask (!%p141_p9), 122880  }
  0x13   : > { %s3999_s27 = smov (!%p141_p9), 74   ;;  %s4007_s10 = smov (!%p141_p9), 58   ;;  %vm2616_vm13 = vcmask (!%p141_p9), 15360  }
  0x14   : > { %s4008_s11 = smov (!%p141_p9), 40   ;;  %s4009_s17 = smov (!%p141_p9), 22  }
  0x15   : > { %s165_s24 = scalar_select %p164_p10, %s4055_s16, 1 }
  0x16   : > { %s4010_s19 = smov 4  }
  0x17   : > { %s3840_s25 = smul.u32 12, %s165_s24  ;;  %s161_s24 = sand.u32 1, %s3976_s13  }
  0x19   : > { %s4091_s28 = scalar_lea.vmem %s5147_s0, %s3840_s25  ;;  %s3700_s25 = sshll.u32 %s161_s24, 7 }
  0x1a   : > { %v4094_v1 = vld [vmem:[%s4091_s28] sm:$0xff]  ;;  %v4100_v3 = vld [vmem:[%s4091_s28 + $0x8] sm:$0xf]  ;;  %s4301_s26 = scalar_lea.vmem [#allocation3], %s3700_s25 }
  0x1b   : > { %177 = vrot.lane.b32.xlu1 %v4094_v1, %s3988_s29  ;;  %v176_v2 = vcombine.high %v4094_v1, %v4094_v1  ;;  %v489_v4 = vld [vmem:[%s4091_s28 + $0x8] sm:$0xf] }
  0x1c   : > { %v658_v5 = vld [vmem:[%s4091_s28 + $0x8] sm:$0xf] }
  0x1d   : > { %179 = vrot.lane.b32.xlu0 %v176_v2, %s3988_s29  ;;  %v827_v6 = vld [vmem:[%s4091_s28 + $0x8] sm:$0xf] }
  0x1e   : > { %v996_v7 = vld [vmem:[%s4091_s28 + $0x8] sm:$0xf] }
  0x1f   : > { %497 = vrot.lane.b32.xlu1 %v176_v2, %s3989_s30  ;;  %v1165_v8 = vld [vmem:[%s4091_s28 + $0x8] sm:$0xf] }
  0x20   : > { %v1334_v9 = vld [vmem:[%s4091_s28 + $0x8] sm:$0xf] }
  0x21   : > { %181 = vrot.lane.b32.xlu0 %v4100_v3, %s3988_s29  ;;  %v1503_v10 = vld [vmem:[%s4091_s28 + $0x8] sm:$0xf]  ;;  %s4000_s28 = smov 56   ;;  %s4001_s29 = smov 38  }
  0x23   : > { %495 = vrot.lane.b32.xlu1 %v4094_v1, %s3989_s30 }
  0x25   : > { %499 = vrot.lane.b32.xlu0 %v489_v4, %s3989_s30  ;;  %s4002_s30 = smov 20  }
  0x27   : > { %668 = vrot.lane.b32.xlu1 %v658_v5, %s3990_s4 }
  0x29   : > { %666 = vrot.lane.b32.xlu0 %v176_v2, %s3990_s4 }
  0x2b   : > { %835 = vrot.lane.b32.xlu1 %v176_v2, %s3991_s5 }
  0x2d   : > { %664 = vrot.lane.b32.xlu0 %v4094_v1, %s3990_s4 }
  0x2f   : > { %833 = vrot.lane.b32.xlu1 %v4094_v1, %s3991_s5 }
  0x31   : > { %837 = vrot.lane.b32.xlu0 %v827_v6, %s3991_s5  ;;  %s4003_s5 = smov 112  }
  0x33   : > { %1006 = vrot.lane.b32.xlu1 %v996_v7, %s3992_s6 }
  0x35   : > { %1004 = vrot.lane.b32.xlu0 %v176_v2, %s3992_s6 }
  0x37   : > { %1173 = vrot.lane.b32.xlu1 %v176_v2, %s3993_s7 }
  0x39   : > { %1002 = vrot.lane.b32.xlu0 %v4094_v1, %s3992_s6  ;;  %s4004_s6 = smov 94  }
  0x3b   : > { %1171 = vrot.lane.b32.xlu1 %v4094_v1, %s3993_s7 }
  0x3d   : > { %1175 = vrot.lane.b32.xlu0 %v1165_v8, %s3993_s7 }
  0x3f   : > { %1344 = vrot.lane.b32.xlu1 %v1334_v9, %s3994_s8 }
  0x41   : > { %1342 = vrot.lane.b32.xlu0 %v176_v2, %s3994_s8 }
  0x43   : > { %1511 = vrot.lane.b32.xlu1 %v176_v2, %s3995_s9 }
  0x45   : > { %1340 = vrot.lane.b32.xlu0 %v4094_v1, %s3994_s8  ;;  %s4005_s8 = smov 76  }
  0x47   : > { %1509 = vrot.lane.b32.xlu1 %v4094_v1, %s3995_s9 }
  0x49   : > { %1513 = vrot.lane.b32.xlu0 %v1503_v10, %s3995_s9  ;;  %s4006_s9 = smov 2  }
  0x4d   : > { %1674 = vperm.xlu0 %3907, %v1671_v11  }
  0x8d   : > { %v178_v13 = vpop.permute.xlu1 %177 }
  0x8f   : > { %v180_v14 = vpop.permute.xlu0 %179 }
  0x90   : > { %v184_v19 = vsel %vm183_vm2, %v178_v13, %v180_v14 }
  0x91   : > { %v498_v15 = vpop.permute.xlu1 %497 }
  0x93   : > { %v182_v17 = vpop.permute.xlu0 %181 }
  0x94   : > { %3780 = vmatpush3.msk.msra.mxu1 %vm190_vm1, %v182_v17  ;;  %v185_v18 = vsel %vm183_vm2, %v180_v14, %v182_v17 }
  0x95   : > { %3703 = vmatprep.subr.msk.mxu0 %vm190_vm1, %v185_v18  ;;  %v496_v20 = vpop.permute.xlu1 %495  ;;  %3782 = vmatmul.mubr.msk.f32.vlgmr.msra.gmra.mrb[0].mxu1 %vm186_vm3, %v3702_v16 }
  0x96   : > { %3704 = vmatpush1.msk.msra.mxu0 %vm190_vm1, %v184_v19  ;;  %3784 = vmatprep.subr.mxu1 %v3986_v0  ;;  %v502_v29 = vsel %vm501_vm4, %v496_v20, %v498_v15 }
  0x97   : > { %3705 = vmatmul.mubr.msk.f32.vlgmr.msra.gmra.mrb[0].mxu0 %vm186_vm3, %v3702_v16  ;;  %3708 = vmatprep.subr.msk.mxu0 %vm190_vm1, %v176_v2  ;;  %v500_v21 = vpop.permute.xlu0 %499 }
  0x98   : > { %3709 = vmatpush1.msk.msra.mxu0 %vm190_vm1, %v4094_v1  ;;  %3785 = vmatpush3.msk.msra.mxu1 %vm190_vm1, %v4100_v3  ;;  %v503_v23 = vsel %vm501_vm4, %v498_v15, %v500_v21 }
  0x99   : > { %v669_v24 = vpop.permute.xlu1 %668  ;;  %3786 = vmatprep.mubr.msk.f32.mxu1 %vm3987_vm0, %v3986_v0  ;;  %3714 = vmatprep.subr.msk.mxu0 %vm190_vm1, %v503_v23 }
  0x9a   : > { %3787 = vmatmul.mubr.msk.f32.vlgmr.msra.gmra.mrb[2].mxu1 %vm186_vm3, %v171_v22  ;;  %3789 = vmatprep.subr.mxu1 %v3986_v0 }
  0x9b   : > { %v667_v25 = vpop.permute.xlu0 %666  ;;  %411 = vmatprep.mubr.f32.mxu0 %v3986_v0  ;;  %3790 = vmatpush3.msk.msra.mxu1 %vm190_vm1, %v500_v21 }
  0x9c   : > { %3791 = vmatprep.mubr.msk.f32.mxu1 %vm3987_vm0, %v3986_v0  ;;  %3794 = vmatprep.subr.mxu1 %v3986_v0  ;;  %v672_v28 = vsel %vm670_vm5, %v667_v25, %v669_v24 }
  0x9d   : > { %v836_v27 = vpop.permute.xlu1 %835 }
  0x9e   : > { %3792 = vmatmul.mubr.msk.f32.vlgmr.msra.gmra.mrb[4].mxu1 %vm186_vm3, %v3713_v26 }
  0x9f   : > { %3710 = vmatmul.mubr.msk.f32.vlgmr.msra.gmra.mrb[0].mxu0 %vm186_vm3, %v171_v22  ;;  %v665_v30 = vpop.permute.xlu0 %664  ;;  %3795 = vmatpush3.msk.msra.mxu1 %vm190_vm1, %v669_v24 }
  0xa0   : > { %3715 = vmatpush1.msk.msra.mxu0 %vm190_vm1, %v502_v29  ;;  %3796 = vmatprep.mubr.msk.f32.mxu1 %vm3987_vm0, %v3986_v0  ;;  %v671_v37 = vsel %vm670_vm5, %v665_v30, %v667_v25 }
  0xa1   : > { %v834_v32 = vpop.permute.xlu1 %833  ;;  %3720 = vmatprep.subr.msk.mxu0 %vm190_vm1, %v672_v28  ;;  %577 = vmatprep.mubr.f32.mxu0 %v3986_v0 }
  0xa2   : > { %3797 = vmatmul.mubr.msk.f32.vlgmr.msra.gmra.mrb[6].mxu1 %vm186_vm3, %v3719_v31  ;;  %3799 = vmatprep.subr.mxu1 %v3986_v0  ;;  %v840_v44 = vsel %vm839_vm6, %v834_v32, %v836_v27 }
  0xa3   : > { %v838_v33 = vpop.permute.xlu0 %837  ;;  %3801 = vmatprep.mubr.msk.f32.mxu1 %vm3987_vm0, %v3986_v0 }
  0xa4   : > { %3800 = vmatpush3.msk.msra.mxu1 %vm190_vm1, %v838_v33  ;;  %v841_v36 = vsel %vm839_vm6, %v836_v27, %v838_v33 }
  0xa5   : > { %v1007_v35 = vpop.permute.xlu1 %1006  ;;  %3804 = vmatprep.subr.mxu1 %v3986_v0 }
  0xa6   : > { %3802 = vmatmul.mubr.msk.f32.vlgmr.msra.gmra.mrb[8].mxu1 %vm186_vm3, %v3725_v34 }
  0xa7   : > { %3716 = vmatmul.mubr.msk.f32.vlgmr.msra.gmra.mrb[0].mxu0 %vm186_vm3, %v3713_v26  ;;  %v1005_v38 = vpop.permute.xlu0 %1004  ;;  %3805 = vmatpush3.msk.msra.mxu1 %vm190_vm1, %v1007_v35 }
  0xa8   : > { %3721 = vmatpush1.msk.msra.mxu0 %vm190_vm1, %v671_v37  ;;  %3806 = vmatprep.mubr.msk.f32.mxu1 %vm3987_vm0, %v3986_v0  ;;  %v1010_v46 = vsel %vm1008_vm7, %v1005_v38, %v1007_v35 }
  0xa9   : > { %v1174_v40 = vpop.permute.xlu1 %1173  ;;  %3726 = vmatprep.subr.msk.mxu0 %vm190_vm1, %v841_v36  ;;  %746 = vmatprep.mubr.f32.mxu0 %v3986_v0 }
  0xaa   : > { %3807 = vmatmul.mubr.msk.f32.vlgmr.msra.gmra.mrb[10].mxu1 %vm186_vm3, %v3731_v39  ;;  %3809 = vmatprep.subr.mxu1 %v3986_v0 }
  0xab   : > { %v1003_v41 = vpop.permute.xlu0 %1002  ;;  %3811 = vmatprep.mubr.msk.f32.mxu1 %vm3987_vm0, %v3986_v0 }
  0xac   : > { %v1009_v50 = vsel %vm1008_vm7, %v1003_v41, %v1005_v38  ;;  %v3997_v41 = vmov 1966171168  }
  0xad   : > { %v1172_v42 = vpop.permute.xlu1 %1171 }
  0xae   : > { %v1178_v55 = vsel %vm1177_vm8, %v1172_v42, %v1174_v40  ;;  %v1712_v42 = vunpack.c.l.s4 %v3997_v41 }
  0xaf   : > { %3722 = vmatmul.mubr.msk.f32.vlgmr.msra.gmra.mrb[0].mxu0 %vm186_vm3, %v3719_v31  ;;  %v1176_v45 = vpop.permute.xlu0 %1175 }
  0xb0   : > { %3727 = vmatpush1.msk.msra.mxu0 %vm190_vm1, %v840_v44  ;;  %3810 = vmatpush3.msk.msra.mxu1 %vm190_vm1, %v1176_v45  ;;  %v1179_v52 = vsel %vm1177_vm8, %v1174_v40, %v1176_v45  ;;  %v1713_v45 = vunpack.c.0.s8 %v1712_v42 }
  0xb1   : > { %3732 = vmatprep.subr.msk.mxu0 %vm190_vm1, %v1010_v46  ;;  %3812 = vmatmul.mubr.msk.f32.vlgmr.msra.gmra.mrb[12].mxu1 %vm186_vm3, %v3737_v43  ;;  %v1345_v47 = vpop.permute.xlu1 %1344 }
  0xb2   : > { %3814 = vmatprep.subr.mxu1 %v3986_v0  ;;  %3816 = vmatprep.mubr.msk.f32.mxu1 %vm3987_vm0, %v3986_v0 }
  0xb3   : > { %v1343_v49 = vpop.permute.xlu0 %1342  ;;  %3815 = vmatpush3.msk.msra.mxu1 %vm190_vm1, %v1345_v47  ;;  %915 = vmatprep.mubr.f32.mxu0 %v3986_v0 }
  0xb4   : > { %3819 = vmatprep.subr.mxu1 %v3986_v0  ;;  %v1348_v56 = vsel %vm1346_vm9, %v1343_v49, %v1345_v47 }
  0xb5   : > { %3817 = vmatmul.mubr.msk.f32.vlgmr.msra.gmra.mrb[14].mxu1 %vm186_vm3, %v3743_v48  ;;  %v1512_v57 = vpop.permute.xlu1 %1511 }
  0xb6   : > { %3821 = vmatprep.mubr.msk.f32.mxu1 %vm3987_vm0, %v3986_v0 }
  0xb7   : > { %3728 = vmatmul.mubr.msk.f32.vlgmr.msra.gmra.mrb[0].mxu0 %vm186_vm3, %v3725_v34  ;;  %v1341_v51 = vpop.permute.xlu0 %1340 }
  0xb8   : > { %3733 = vmatpush1.msk.msra.mxu0 %vm190_vm1, %v1009_v50  ;;  %1084 = vmatprep.mubr.f32.mxu0 %v3986_v0  ;;  %v1347_v58 = vsel %vm1346_vm9, %v1341_v51, %v1343_v49 }
  0xb9   : > { %3738 = vmatprep.subr.msk.mxu0 %vm190_vm1, %v1179_v52  ;;  %v1510_v60 = vpop.permute.xlu1 %1509 }
  0xba   : > { %v1516_v61 = vsel %vm1515_vm10, %v1510_v60, %v1512_v57 }
  0xbb   : > { %v1514_v54 = vpop.permute.xlu0 %1513 }
  0xbc   : > { %3820 = vmatpush3.msk.msra.mxu1 %vm190_vm1, %v1514_v54  ;;  %v1517_v59 = vsel %vm1515_vm10, %v1512_v57, %v1514_v54 }
  0xbd   : > { %3822 = vmatmul.mubr.msk.f32.vlgmr.msra.gmra.mrb[16].mxu1 %vm186_vm3, %v3749_v53 }
  0xbf   : > { %3734 = vmatmul.mubr.msk.f32.vlgmr.msra.gmra.mrb[0].mxu0 %vm186_vm3, %v3731_v39 }
  0xc0   : > { %3739 = vmatpush1.msk.msra.mxu0 %vm190_vm1, %v1178_v55  ;;  %1253 = vmatprep.mubr.f32.mxu0 %v3986_v0 }
  0xc1   : > { %3744 = vmatprep.subr.msk.mxu0 %vm190_vm1, %v1348_v56 }
  0xc7   : > { %3740 = vmatmul.mubr.msk.f32.vlgmr.msra.gmra.mrb[0].mxu0 %vm186_vm3, %v3737_v43  ;;  %v1714_v43 = vlaneseq }
  0xc8   : > { %3745 = vmatpush1.msk.msra.mxu0 %vm190_vm1, %v1347_v58  ;;  %1422 = vmatprep.mubr.f32.mxu0 %v3986_v0 }
  0xc9   : > { %3750 = vmatprep.subr.msk.mxu0 %vm190_vm1, %v1517_v59  ;;  %v4240_v46 = vshrl.u32 %v1714_v43, 7 }
  0xcb   : > { %v4322_v42 = vsub.s32 1, %v4240_v46 }
  0xcc   : > { %v1675_v22 = vpop.permute.xlu0 %1674 }
  0xcf   : > { %3746 = vmatmul.mubr.msk.f32.vlgmr.msra.gmra.mrb[0].mxu0 %vm186_vm3, %v3743_v48  ;;  %v4243_v48 = vsub.s32 %v1713_v45, %v4240_v46 }
  0xd0   : > { %3751 = vmatpush1.msk.msra.mxu0 %vm190_vm1, %v1516_v61  ;;  %1591 = vmatprep.mubr.f32.mxu0 %v3986_v0 }
  0xd7   : > { %3752 = vmatmul.mubr.msk.f32.vlgmr.msra.gmra.mrb[0].mxu0 %vm186_vm3, %v3749_v53  ;;  %v4248_v53 = vsub.s32 0, %v4240_v46 }
 0x168   : > { %v334_v62 = vpop.f32.mrb[0].mxu1 }
 0x169   : > { %v3783_v63 = vpop.f32.mrb[1].mxu1 }
 0x16d   : > { %v484_v1 = vpop.f32.mrb[2].mxu1 }
 0x16e   : > { %v485_v2 = vadd.f32 %v484_v1, %v334_v62  ;;  %v3788_v3 = vpop.f32.mrb[3].mxu1 }
 0x171   : > { %v650_v4 = vpop.f32.mrb[4].mxu1 }
 0x172   : > { %v656_v5 = vadd.f32 %v650_v4, %v485_v2  ;;  %v3793_v6 = vpop.f32.mrb[5].mxu1 }
 0x175   : > { %v819_v7 = vpop.f32.mrb[6].mxu1 }
 0x176   : > { %v825_v8 = vadd.f32 %v819_v7, %v656_v5  ;;  %v3798_v9 = vpop.f32.mrb[7].mxu1 }
 0x179   : > { %v988_v10 = vpop.f32.mrb[8].mxu1 }
 0x17a   : > { %v994_v11 = vadd.f32 %v988_v10, %v825_v8  ;;  %v3803_v12 = vpop.f32.mrb[9].mxu1 }
 0x17d   : > { %v1157_v13 = vpop.f32.mrb[10].mxu1 }
 0x17e   : > { %v1163_v14 = vadd.f32 %v1157_v13, %v994_v11  ;;  %v3808_v15 = vpop.f32.mrb[11].mxu1 }
 0x184   : > { %v1326_v0 = vpop.f32.mrb[12].mxu1 }
 0x185   : > { %v1332_v16 = vadd.f32 %v1326_v0, %v1163_v14  ;;  %v3813_v17 = vpop.f32.mrb[13].mxu1 }
 0x188   : > { %v1495_v18 = vpop.f32.mrb[14].mxu1 }
 0x189   : > { %v1501_v19 = vadd.f32 %v1495_v18, %v1332_v16  ;;  %v3818_v20 = vpop.f32.mrb[15].mxu1 }
 0x190   : > { %v1664_v21 = vpop.f32.mrb[16].mxu1 }
 0x191   : > { %v1670_v23 = vadd.f32 %v1664_v21, %v1501_v19  ;;  %v3823_v24 = vpop.f32.mrb[17].mxu1 }
 0x193   : > { %v1679_v25 = vadd.f32 %v1675_v22, %v1670_v23 }
 0x195   : > { %v1682_v26 = vsub.f32 0.0, %v1679_v25 }
 0x197   : > { %v1687_v27 = vmul.f32 1.442695, %v1682_v26 }
 0x199   : > { %3910 = vpow2.f32 %v1687_v27 }
 0x1a3   : > { %v3911_v28 = vpop.eup %3910 }
 0x1a4   : > { %v1691_v29 = vadd.f32 1.0, %v3911_v28 }
 0x1a6   : > { %3912 = vrcp.f32 %v1691_v29 }
 0x1aa   : > { %v1593_v30 = vpop.f32.mrb[0].mxu0 }
 0x1ab   : > { %v1677_v31 = vadd.f32 %v1675_v22, %v1593_v30  ;;  %v1595_v32 = vpop.f32.mrb[1].mxu0 }
 0x1ac   : > { %v1678_v33 = vadd.f32 %v1675_v22, %v1595_v32 }
 0x1ad   : > { %v1680_v34 = vsub.f32 0.0, %v1677_v31 }
 0x1ae   : > { %v1681_v35 = vsub.f32 0.0, %v1678_v33 }
 0x1af   : > { %v1683_v36 = vmul.f32 1.442695, %v1680_v34 }
 0x1b0   : > { %v3913_v37 = vpop.eup %3912  ;;  %v1685_v38 = vmul.f32 1.442695, %v1681_v35 }
 0x1b1   : > { %v1697_v39 = vmul.f32 %v3913_v37, %v1691_v29  ;;  %3914 = vpow2.f32 %v1683_v36 }
 0x1b2   : > { %3916 = vpow2.f32 %v1685_v38 }
 0x1b3   : > { %v1700_v40 = vsub.f32 2.0, %v1697_v39 }
 0x1b5   : > { %v1703_v44 = vmul.f32 %v3913_v37, %v1700_v40 }
 0x1b7   : > { %1707 = vst.msk [vmem:[#allocation2 + $0x10] sm:$0xff] %vm1706_vm11, %v1703_v44 }
 0x1bb   : > { %v3915_v47 = vpop.eup %3914 }
 0x1bc   : > { %v3917_v49 = vpop.eup %3916  ;;  %v1689_v50 = vadd.f32 1.0, %v3915_v47 }
 0x1bd   : > { %v1690_v51 = vadd.f32 1.0, %v3917_v49 }
 0x1be   : > { %3918 = vrcp.f32 %v1689_v50  ;;  %v4245_v52 = vld [vmem:[#allocation2 + $0x10] sm:$0xff] }
 0x1bf   : > { %3920 = vrcp.f32 %v1690_v51  ;;  %v3514_v54 = vrot.slane %v4245_v52, %v4243_v48  ;;  %v3507_v55 = vcombine.high %v4245_v52, %v4245_v52 }
 0x1c1   : > { %v3530_v56 = vrot.slane %v3514_v54, %v4243_v48  ;;  %v3522_v57 = vcombine.high %v3514_v54, %v3514_v54  ;;  %v3521_v58 = vrot.slane %v3507_v55, %v4243_v48 }
 0x1c3   : > { %v3559_v59 = vrot.slane %v3530_v56, %v4248_v53  ;;  %v3544_v60 = vrot.slane %v3522_v57, %v4243_v48  ;;  %v3552_v61 = vcombine.high %v3530_v56, %v3530_v56  ;;  %v3537_v62 = vrot.slane %v3521_v58, %v4243_v48 }
 0x1c4   : > { %v3523_v63 = vcombine.high %v3521_v58, %v3521_v58 }
 0x1c5   : > { %3588 = vrot.lane.b32.xlu0 %v3559_v59, %s3998_s20  ;;  %v3563_v1 = vrot.slane %v3544_v60, %v4248_v53  ;;  %v3554_v2 = vcombine.high %v3544_v60, %v3544_v60  ;;  %v3553_v3 = vcombine.high %v3537_v62, %v3537_v62  ;;  %v3567_v5 = vrot.slane %v3552_v61, %v4248_v53 }
 0x1c6   : > { %v3551_v4 = vrot.slane %v3523_v63, %v4243_v48  ;;  %v3575_v15 = vrot.slane %v3537_v62, %v4248_v53 }
 0x1c7   : > { %3590 = vrot.lane.b32.xlu1 %v3563_v1, %s3998_s20  ;;  %v4265_v8 = vrot.slane %v3553_v3, %v4248_v53  ;;  %v3571_v11 = vrot.slane %v3554_v2, %v4248_v53 }
 0x1c8   : > { %v3919_v6 = vpop.eup %3918  ;;  %v3555_v7 = vcombine.high %v3551_v4, %v3551_v4  ;;  %v3579_v17 = vrot.slane %v3551_v4, %v4248_v53 }
 0x1c9   : > { %v3921_v9 = vpop.eup %3920  ;;  %v1695_v10 = vmul.f32 %v3919_v6, %v1689_v50  ;;  %3592 = vrot.lane.b32.xlu0 %v3567_v5, %s3998_s20 }
 0x1ca   : > { %v1696_v12 = vmul.f32 %v3921_v9, %v1690_v51  ;;  %v4271_v13 = vrot.slane %v3555_v7, %v4248_v53 }
 0x1cb   : > { %v1698_v14 = vsub.f32 2.0, %v1695_v10  ;;  %3594 = vrot.lane.b32.xlu1 %v3571_v11, %s3998_s20 }
 0x1cc   : > { %v1699_v0 = vsub.f32 2.0, %v1696_v12 }
 0x1cd   : > { %v1701_v16 = vmul.f32 %v3919_v6, %v1698_v14  ;;  %3596 = vrot.lane.b32.xlu0 %v3575_v15, %s3998_s20 }
 0x1ce   : > { %v4279_v18 = vmul.f32 %v3921_v9, %v1699_v0 }
 0x1cf   : > { %v1710_v19 = vcombine.high %v1701_v16, %v1701_v16  ;;  %v1717_v20 = vrot.slane %v1701_v16, %v4243_v48  ;;  %3598 = vrot.lane.b32.xlu1 %v3579_v17, %s3998_s20 }
 0x1d0   : > { %v2650_v21 = vrot.slane %v4279_v18, %v4243_v48  ;;  %v2470_v22 = vcombine.low %v1701_v16, %v4279_v18  ;;  %v2471_v23 = vcombine.high %v1701_v16, %v4279_v18  ;;  %v3335_v27 = vcombine.low %v4279_v18, %v4245_v52 }
 0x1d1   : > { %v1724_v24 = vrot.slane %v1710_v19, %v4243_v48  ;;  %v1725_v25 = vcombine.high %v1717_v20, %v1717_v20  ;;  %v1733_v26 = vrot.slane %v1717_v20, %v4243_v48  ;;  %v3103_v30 = vcombine.high %v4279_v18, %v4279_v18 }
 0x1d2   : > { %v4292_v28 = vrot.slane %v2650_v21, %v4243_v48  ;;  %v4295_v29 = vrot.slane %v2470_v22, %v4243_v48  ;;  %v4307_v36 = vrot.slane %v2471_v23, %v4243_v48  ;;  %v2658_v37 = vcombine.high %v2650_v21, %v2650_v21 }
 0x1d3   : > { %v1726_v31 = vcombine.high %v1724_v24, %v1724_v24  ;;  %v1740_v32 = vrot.slane %v1724_v24, %v4243_v48  ;;  %v1747_v33 = vrot.slane %v1725_v25, %v4243_v48  ;;  %v1755_v34 = vcombine.high %v1733_v26, %v1733_v26  ;;  %1768 = vst.msk [vmem:[%s4301_s26] sm:$0x1] %vm1767_vm12, %v1733_v26 }
 0x1d4   : > { %v1945_v35 = vrot.slane %v1733_v26, %v4248_v53  ;;  %v4335_v44 = vrot.slane %v4292_v28, %v4248_v53  ;;  %v4339_v45 = vrot.slane %v4295_v29, %v4243_v48  ;;  %v4343_v46 = vrot.slane %v4307_v36, %v4243_v48 }
 0x1d5   : > { %v1754_v38 = vrot.slane %v1726_v31, %v4243_v48  ;;  %v4310_v39 = vcombine.high %v1740_v32, %v1740_v32  ;;  %v1757_v40 = vcombine.high %v1747_v33, %v1747_v33  ;;  %1769 = vst.msk [vmem:[%s4301_s26 + $0x10] sm:$0x1] %vm1767_vm12, %v1747_v33  ;;  %1770 = vst.msk [vmem:[%s4301_s26 + $0x20] sm:$0x1] %vm1767_vm12, %v1755_v34 }
 0x1d6   : > { %1772 = vst.msk [vmem:[%s4301_s26 + $0x40] sm:$0x1] %vm1767_vm12, %v1740_v32  ;;  %1974 = vrot.lane.b32.xlu0 %v1945_v35, %s3993_s7  ;;  %1859 = vrot.lane.b32.xlu1 %v1945_v35, %s3990_s4  ;;  %v1834_v41 = vrot.slane %v1747_v33, %v4248_v53  ;;  %v3148_v47 = vcombine.high %v4292_v28, %v4292_v28 }
 0x1d7   : > { %v4324_v43 = vcombine.high %v1754_v38, %v1754_v38  ;;  %1771 = vst.msk [vmem:[%s4301_s26 + $0x30] sm:$0x1] %vm1767_vm12, %v1757_v40  ;;  %1773 = vst.msk [vmem:[%s4301_s26 + $0x50] sm:$0x1] %vm1767_vm12, %v1754_v38  ;;  %v2680_v49 = vrot.slane %v2658_v37, %v4243_v48  ;;  %v4354_v50 = vrot.slane %v1755_v34, %v4248_v53 }
 0x1d8   : > { %1774 = vst.msk [vmem:[%s4301_s26 + $0x60] sm:$0x1] %vm1767_vm12, %v4310_v39  ;;  %v4357_v51 = vrot.slane %v1740_v32, %v4248_v53  ;;  %v2527_v54 = vrot.slane %v4339_v45, %v4322_v42  ;;  %v2559_v55 = vrot.slane %v4343_v46, %v4322_v42  ;;  %v3343_v58 = vrot.slane %v3335_v27, %v4243_v48 }
 0x1d9   : > { %1775 = vst.msk [vmem:[%s4301_s26 + $0x70] sm:$0x1] %vm1767_vm12, %v4324_v43  ;;  %v4364_v56 = vrot.slane %v2680_v49, %v4248_v53  ;;  %v2805_v57 = vcombine.high %v2680_v49, %v2680_v49  ;;  %v3336_v59 = vcombine.high %v4279_v18, %v4245_v52  ;;  %v4372_v60 = vrot.slane %v1757_v40, %v4248_v53 }
 0x1da   : > { %2089 = vrot.lane.b32.xlu0 %v1945_v35, %s3999_s27  ;;  %1861 = vrot.lane.b32.xlu1 %v1834_v41, %s3990_s4  ;;  %v4375_v61 = vrot.slane %v3343_v58, %v4243_v48  ;;  %v4379_v63 = vrot.slane %v1754_v38, %v4248_v53  ;;  %v3351_v1 = vcombine.high %v3343_v58, %v3343_v58 }
 0x1db   : > { %v3350_v62 = vrot.slane %v3336_v59, %v4243_v48  ;;  %v2523_v3 = vrot.slane %v4339_v45, %v4248_v53  ;;  %v2555_v4 = vrot.slane %v4343_v46, %v4248_v53  ;;  %v2657_v5 = vrot.slane %v3103_v30, %v4243_v48 }
 0x1dc   : > { %v4394_v6 = vrot.slane %v3148_v47, %v4248_v53  ;;  %v2486_v10 = vcombine.high %v4295_v29, %v4295_v29  ;;  %v4404_v14 = vcombine.high %v4339_v45, %v4339_v45  ;;  %v2487_v15 = vcombine.high %v4307_v36, %v4307_v36 }
 0x1dd   : > { %v4382_v2 = vrot.slane %v3350_v62, %v4243_v48  ;;  %v3352_v52 = vcombine.high %v3350_v62, %v3350_v62  ;;  %v2659_v7 = vcombine.high %v2657_v5, %v2657_v5  ;;  %v2673_v9 = vrot.slane %v2657_v5, %v4243_v48 }
 0x1de   : > { %2204 = vrot.lane.b32.xlu0 %v1945_v35, %s4000_s28  ;;  %1976 = vrot.lane.b32.xlu1 %v1834_v41, %s3993_s7  ;;  %v4409_v0 = vrot.slane %v2486_v10, %v4243_v48  ;;  %v2543_v16 = vrot.slane %v4404_v14, %v4322_v42  ;;  %v4417_v17 = vrot.slane %v2487_v15, %v4243_v48 }
 0x1df   : > { %v2689_v11 = vcombine.high %v2673_v9, %v2673_v9  ;;  %v4400_v12 = vrot.slane %v2673_v9, %v4248_v53  ;;  %v4423_v19 = vcombine.high %v4343_v46, %v4343_v46  ;;  %v4433_v22 = vrot.slane %v2805_v57, %v4248_v53 }
 0x1e0   : > { %v2535_v18 = vrot.slane %v4409_v0, %v4322_v42  ;;  %v2567_v20 = vrot.slane %v4417_v17, %v4322_v42  ;;  %v2687_v23 = vrot.slane %v2659_v7, %v4243_v48  ;;  %v3388_v24 = vrot.slane %v4375_v61, %v4248_v53 }
 0x1e1   : > { %v2575_v21 = vrot.slane %v4423_v19, %v4322_v42  ;;  %v3420_v26 = vrot.slane %v4382_v2, %v4248_v53  ;;  %v4445_v27 = vrot.slane %v4310_v39, %v4248_v53  ;;  %v4451_v28 = vrot.slane %v3351_v1, %v4243_v48 }
 0x1e2   : > { %2319 = vrot.lane.b32.xlu0 %v1945_v35, %s4001_s29  ;;  %2091 = vrot.lane.b32.xlu1 %v1834_v41, %s3999_s27  ;;  %v4439_v25 = vrot.slane %v2687_v23, %v4248_v53  ;;  %v4455_v29 = vcombine.high %v4375_v61, %v4375_v61  ;;  %v2531_v30 = vrot.slane %v4409_v0, %v4248_v53 }
 0x1e3   : > { %v3400_v31 = vrot.slane %v4451_v28, %v4322_v42  ;;  %v4465_v32 = vrot.slane %v3352_v52, %v4243_v48  ;;  %v2539_v34 = vrot.slane %v4404_v14, %v4248_v53  ;;  %v2563_v36 = vrot.slane %v4417_v17, %v4248_v53 }
 0x1e4   : > { %v3408_v33 = vrot.slane %v4455_v29, %v4322_v42  ;;  %v2571_v48 = vrot.slane %v4423_v19, %v4248_v53  ;;  %v4484_v39 = vrot.slane %v2689_v11, %v4248_v53  ;;  %v4488_v40 = vrot.slane %v4324_v43, %v4248_v53 }
 0x1e5   : > { %v3432_v37 = vrot.slane %v4465_v32, %v4322_v42  ;;  %v3404_v47 = vrot.slane %v4455_v29, %v4248_v53  ;;  %v4500_v49 = vcombine.high %v4409_v0, %v4409_v0  ;;  %v3428_v43 = vrot.slane %v4465_v32, %v4248_v53 }
 0x1e6   : > { %2434 = vrot.lane.b32.xlu0 %v1945_v35, %s4002_s30  ;;  %2206 = vrot.lane.b32.xlu1 %v1834_v41, %s4000_s28  ;;  %v4473_v35 = vcombine.high %v4382_v2, %v4382_v2  ;;  %v2691_v58 = vcombine.high %v2687_v23, %v2687_v23  ;;  %v4531_v5 = vcombine.high %v4465_v32, %v4465_v32 }
 0x1e7   : > { %v2551_v57 = vrot.slane %v4500_v49, %v4322_v42  ;;  %v2547_v62 = vrot.slane %v4500_v49, %v4248_v53  ;;  %v3392_v15 = vrot.slane %v4375_v61, %v4322_v42  ;;  %v3424_v23 = vrot.slane %v4382_v2, %v4322_v42 }
 0x1e8   : > { %v3440_v38 = vrot.slane %v4473_v35, %v4322_v42  ;;  %v4523_v52 = vrot.slane %v2691_v58, %v4248_v53  ;;  %v3444_v10 = vrot.slane %v4531_v5, %v4248_v53  ;;  %v3448_v11 = vrot.slane %v4531_v5, %v4322_v42 }
 0x1ea   : > { %2724 = vrot.lane.b32.xlu0 %v4335_v44, %s4003_s5  ;;  %2321 = vrot.lane.b32.xlu1 %v1834_v41, %s4001_s29 }
 0x1ee   : > { %2839 = vrot.lane.b32.xlu0 %v4335_v44, %s4004_s6  ;;  %2436 = vrot.lane.b32.xlu1 %v1834_v41, %s4002_s30  ;;  %v3396_v41 = vrot.slane %v4451_v28, %v4248_v53 }
 0x1f2   : > { %2954 = vrot.lane.b32.xlu0 %v4335_v44, %s4005_s8  ;;  %2586 = vrot.lane.b32.xlu1 %v2527_v54, %s4006_s9  ;;  %v4506_v54 = vcombine.high %v4417_v17, %v4417_v17 }
 0x1f4   : > { %v2583_v59 = vrot.slane %v4506_v54, %v4322_v42  ;;  %v2579_v1 = vrot.slane %v4506_v54, %v4248_v53 }
 0x1f6   : > { %3069 = vrot.lane.b32.xlu0 %v4335_v44, %s4007_s10  ;;  %2602 = vrot.lane.b32.xlu1 %v2559_v55, %s4006_s9  ;;  %v3436_v55 = vrot.slane %v4473_v35, %v4248_v53 }
 0x1fa   : > { %3184 = vrot.lane.b32.xlu0 %v4335_v44, %s4008_s11  ;;  %2726 = vrot.lane.b32.xlu1 %v4364_v56, %s4003_s5 }
 0x1fe   : > { %3299 = vrot.lane.b32.xlu0 %v4335_v44, %s4009_s17  ;;  %2841 = vrot.lane.b32.xlu1 %v4364_v56, %s4004_s6  ;;  %v4527_v44 = vcombine.high %v4451_v28, %v4451_v28 }
 0x200   : > { %v3412_v7 = vrot.slane %v4527_v44, %v4248_v53  ;;  %v3416_v9 = vrot.slane %v4527_v44, %v4322_v42 }
 0x202   : > { %1863 = vrot.lane.b32.xlu0 %v4354_v50, %s3990_s4  ;;  %2956 = vrot.lane.b32.xlu1 %v4364_v56, %s4005_s8 }
 0x206   : > { %3071 = vrot.lane.b32.xlu1 %v4364_v56, %s4007_s10  ;;  %1867 = vrot.lane.b32.xlu0 %v4357_v51, %s3990_s4 }
 0x20a   : > { %3186 = vrot.lane.b32.xlu1 %v4364_v56, %s4008_s11  ;;  %1978 = vrot.lane.b32.xlu0 %v4354_v50, %s3993_s7 }
 0x20e   : > { %3301 = vrot.lane.b32.xlu1 %v4364_v56, %s4009_s17  ;;  %1982 = vrot.lane.b32.xlu0 %v4357_v51, %s3993_s7 }
 0x212   : > { %3451 = vrot.lane.b32.xlu1 %v3392_v15, %s4010_s19  ;;  %2093 = vrot.lane.b32.xlu0 %v4354_v50, %s3999_s27 }
 0x216   : > { %3467 = vrot.lane.b32.xlu1 %v3424_v23, %s4010_s19  ;;  %2097 = vrot.lane.b32.xlu0 %v4357_v51, %s3999_s27 }
 0x21a   : > { %1865 = vrot.lane.b32.xlu1 %v4372_v60, %s3990_s4  ;;  %2208 = vrot.lane.b32.xlu0 %v4354_v50, %s4000_s28 }
 0x21e   : > { %2212 = vrot.lane.b32.xlu0 %v4357_v51, %s4000_s28  ;;  %1869 = vrot.lane.b32.xlu1 %v4379_v63, %s3990_s4 }
 0x222   : > { %2323 = vrot.lane.b32.xlu0 %v4354_v50, %s4001_s29  ;;  %1980 = vrot.lane.b32.xlu1 %v4372_v60, %s3993_s7 }
 0x226   : > { %2327 = vrot.lane.b32.xlu0 %v4357_v51, %s4001_s29  ;;  %1984 = vrot.lane.b32.xlu1 %v4379_v63, %s3993_s7 }
 0x22a   : > { %2438 = vrot.lane.b32.xlu0 %v4354_v50, %s4002_s30  ;;  %2095 = vrot.lane.b32.xlu1 %v4372_v60, %s3999_s27 }
 0x22e   : > { %2442 = vrot.lane.b32.xlu0 %v4357_v51, %s4002_s30  ;;  %2099 = vrot.lane.b32.xlu1 %v4379_v63, %s3999_s27 }
 0x232   : > { %2584 = vrot.lane.b32.xlu0 %v2523_v3, %s4006_s9  ;;  %2210 = vrot.lane.b32.xlu1 %v4372_v60, %s4000_s28 }
 0x236   : > { %2600 = vrot.lane.b32.xlu0 %v2555_v4, %s4006_s9  ;;  %2214 = vrot.lane.b32.xlu1 %v4379_v63, %s4000_s28 }
 0x237   : > { %v3589_v50 = vpop.permute.xlu0 %3588 }
 0x238   : > { %3612 = vst.msk [vmem:[%s4301_s26 + $0xf] sm:$0x1] %vm1767_vm12, %v3589_v50 }
 0x239   : > { %v3591_v51 = vpop.permute.xlu1 %3590 }
 0x23a   : > { %3613 = vst.msk [vmem:[%s4301_s26 + $0x1f] sm:$0x1] %vm1767_vm12, %v3591_v51  ;;  %2728 = vrot.lane.b32.xlu0 %v4394_v6, %s4003_s5  ;;  %2325 = vrot.lane.b32.xlu1 %v4372_v60, %s4001_s29 }
 0x23b   : > { %v3593_v45 = vpop.permute.xlu0 %3592 }
 0x23c   : > { %3614 = vst.msk [vmem:[%s4301_s26 + $0x2f] sm:$0x1] %vm1767_vm12, %v3593_v45 }
 0x23d   : > { %v3595_v46 = vpop.permute.xlu1 %3594 }
 0x23e   : > { %3615 = vst.msk [vmem:[%s4301_s26 + $0x3f] sm:$0x1] %vm1767_vm12, %v3595_v46  ;;  %2732 = vrot.lane.b32.xlu0 %v4400_v12, %s4003_s5  ;;  %2329 = vrot.lane.b32.xlu1 %v4379_v63, %s4001_s29 }
 0x23f   : > { %v3597_v56 = vpop.permute.xlu0 %3596 }
 0x240   : > { %3616 = vst.msk [vmem:[%s4301_s26 + $0x4f] sm:$0x1] %vm1767_vm12, %v3597_v56 }
 0x241   : > { %v3599_v3 = vpop.permute.xlu1 %3598 }
 0x242   : > { %3617 = vst.msk [vmem:[%s4301_s26 + $0x5f] sm:$0x1] %vm1767_vm12, %v3599_v3  ;;  %2843 = vrot.lane.b32.xlu0 %v4394_v6, %s4004_s6  ;;  %2440 = vrot.lane.b32.xlu1 %v4372_v60, %s4002_s30 }
 0x246   : > { %2847 = vrot.lane.b32.xlu0 %v4400_v12, %s4004_s6  ;;  %2444 = vrot.lane.b32.xlu1 %v4379_v63, %s4002_s30 }
 0x248   : > { %v1975_v4 = vpop.permute.xlu0 %1974  ;;  %v1860_v58 = vpop.permute.xlu1 %1859 }
 0x249   : > { %1998 = vst.msk [vmem:[%s4301_s26 + $0x2] sm:$0x1] %vm1767_vm12, %v1975_v4  ;;  %1883 = vst.msk [vmem:[%s4301_s26 + $0x1] sm:$0x1] %vm1767_vm12, %v1860_v58 }
 0x24a   : > { %2958 = vrot.lane.b32.xlu0 %v4394_v6, %s4005_s8  ;;  %2590 = vrot.lane.b32.xlu1 %v2535_v18, %s4006_s9 }
 0x24c   : > { %v2090_v60 = vpop.permute.xlu0 %2089  ;;  %v1862_v15 = vpop.permute.xlu1 %1861 }
 0x24d   : > { %2113 = vst.msk [vmem:[%s4301_s26 + $0x3] sm:$0x1] %vm1767_vm12, %v2090_v60  ;;  %1884 = vst.msk [vmem:[%s4301_s26 + $0x11] sm:$0x1] %vm1767_vm12, %v1862_v15 }
 0x24e   : > { %2962 = vrot.lane.b32.xlu0 %v4400_v12, %s4005_s8  ;;  %2594 = vrot.lane.b32.xlu1 %v2543_v16, %s4006_s9 }
 0x250   : > { %v2205_v63 = vpop.permute.xlu0 %2204  ;;  %v1977_v23 = vpop.permute.xlu1 %1976 }
 0x251   : > { %2228 = vst.msk [vmem:[%s4301_s26 + $0x4] sm:$0x1] %vm1767_vm12, %v2205_v63  ;;  %1999 = vst.msk [vmem:[%s4301_s26 + $0x12] sm:$0x1] %vm1767_vm12, %v1977_v23 }
 0x252   : > { %3073 = vrot.lane.b32.xlu0 %v4394_v6, %s4007_s10  ;;  %2606 = vrot.lane.b32.xlu1 %v2567_v20, %s4006_s9 }
 0x254   : > { %v2320_v18 = vpop.permute.xlu0 %2319  ;;  %v2092_v50 = vpop.permute.xlu1 %2091 }
 0x255   : > { %2343 = vst.msk [vmem:[%s4301_s26 + $0x5] sm:$0x1] %vm1767_vm12, %v2320_v18  ;;  %2114 = vst.msk [vmem:[%s4301_s26 + $0x13] sm:$0x1] %vm1767_vm12, %v2092_v50 }
 0x256   : > { %3077 = vrot.lane.b32.xlu0 %v4400_v12, %s4007_s10  ;;  %2610 = vrot.lane.b32.xlu1 %v2575_v21, %s4006_s9 }
 0x258   : > { %v2435_v16 = vpop.permute.xlu0 %2434  ;;  %v2207_v51 = vpop.permute.xlu1 %2206 }
 0x259   : > { %2458 = vst.msk [vmem:[%s4301_s26 + $0x6] sm:$0x1] %vm1767_vm12, %v2435_v16  ;;  %2229 = vst.msk [vmem:[%s4301_s26 + $0x14] sm:$0x1] %vm1767_vm12, %v2207_v51 }
 0x25a   : > { %3188 = vrot.lane.b32.xlu0 %v4394_v6, %s4008_s11  ;;  %2730 = vrot.lane.b32.xlu1 %v4433_v22, %s4003_s5 }
 0x25c   : > { %v2725_v20 = vpop.permute.xlu0 %2724  ;;  %v2322_v45 = vpop.permute.xlu1 %2321 }
 0x25d   : > { %2748 = vst.msk [vmem:[%s4301_s26 + $0x8] sm:$0x1] %vm1767_vm12, %v2725_v20  ;;  %2344 = vst.msk [vmem:[%s4301_s26 + $0x15] sm:$0x1] %vm1767_vm12, %v2322_v45 }
 0x25e   : > { %3192 = vrot.lane.b32.xlu0 %v4400_v12, %s4008_s11  ;;  %2734 = vrot.lane.b32.xlu1 %v4439_v25, %s4003_s5 }
 0x260   : > { %v2840_v21 = vpop.permute.xlu0 %2839  ;;  %v2437_v46 = vpop.permute.xlu1 %2436 }
 0x261   : > { %2863 = vst.msk [vmem:[%s4301_s26 + $0x9] sm:$0x1] %vm1767_vm12, %v2840_v21  ;;  %2459 = vst.msk [vmem:[%s4301_s26 + $0x16] sm:$0x1] %vm1767_vm12, %v2437_v46 }
 0x262   : > { %3449 = vrot.lane.b32.xlu0 %v3388_v24, %s4010_s19  ;;  %2845 = vrot.lane.b32.xlu1 %v4433_v22, %s4004_s6 }
 0x264   : > { %v2955_v56 = vpop.permute.xlu0 %2954  ;;  %v4697_v3 = vpop.permute.xlu1 %2586 }
 0x265   : > { %2978 = vst.msk [vmem:[%s4301_s26 + $0xa] sm:$0x1] %vm1767_vm12, %v2955_v56 }
 0x266   : > { %3465 = vrot.lane.b32.xlu0 %v3420_v26, %s4010_s19  ;;  %2849 = vrot.lane.b32.xlu1 %v4439_v25, %s4004_s6 }
 0x268   : > { %v3070_v61 = vpop.permute.xlu0 %3069  ;;  %v4707_v24 = vpop.permute.xlu1 %2602 }
 0x269   : > { %3093 = vst.msk [vmem:[%s4301_s26 + $0xb] sm:$0x1] %vm1767_vm12, %v3070_v61 }
 0x26a   : > { %3303 = vrot.lane.b32.xlu0 %v4394_v6, %s4009_s17  ;;  %2960 = vrot.lane.b32.xlu1 %v4433_v22, %s4005_s8 }
 0x26c   : > { %v3185_v2 = vpop.permute.xlu0 %3184  ;;  %v2727_v4 = vpop.permute.xlu1 %2726 }
 0x26d   : > { %3208 = vst.msk [vmem:[%s4301_s26 + $0xc] sm:$0x1] %vm1767_vm12, %v3185_v2  ;;  %2749 = vst.msk [vmem:[%s4301_s26 + $0x18] sm:$0x1] %vm1767_vm12, %v2727_v4 }
 0x26e   : > { %3307 = vrot.lane.b32.xlu0 %v4400_v12, %s4009_s17  ;;  %2964 = vrot.lane.b32.xlu1 %v4439_v25, %s4005_s8 }
 0x270   : > { %v3300_v6 = vpop.permute.xlu0 %3299  ;;  %v2842_v26 = vpop.permute.xlu1 %2841 }
 0x271   : > { %3323 = vst.msk [vmem:[%s4301_s26 + $0xd] sm:$0x1] %vm1767_vm12, %v3300_v6  ;;  %2864 = vst.msk [vmem:[%s4301_s26 + $0x19] sm:$0x1] %vm1767_vm12, %v2842_v26 }
 0x272   : > { %1871 = vrot.lane.b32.xlu0 %v4445_v27, %s3990_s4  ;;  %3075 = vrot.lane.b32.xlu1 %v4433_v22, %s4007_s10 }
 0x274   : > { %v1864_v12 = vpop.permute.xlu0 %1863  ;;  %v2957_v58 = vpop.permute.xlu1 %2956 }
 0x275   : > { %1885 = vst.msk [vmem:[%s4301_s26 + $0x21] sm:$0x1] %vm1767_vm12, %v1864_v12  ;;  %2979 = vst.msk [vmem:[%s4301_s26 + $0x1a] sm:$0x1] %vm1767_vm12, %v2957_v58 }
 0x276   : > { %1986 = vrot.lane.b32.xlu0 %v4445_v27, %s3993_s7  ;;  %3079 = vrot.lane.b32.xlu1 %v4439_v25, %s4007_s10 }
 0x278   : > { %v3072_v60 = vpop.permute.xlu1 %3071  ;;  %v1868_v15 = vpop.permute.xlu0 %1867 }
 0x279   : > { %3094 = vst.msk [vmem:[%s4301_s26 + $0x1b] sm:$0x1] %vm1767_vm12, %v3072_v60  ;;  %1887 = vst.msk [vmem:[%s4301_s26 + $0x41] sm:$0x1] %vm1767_vm12, %v1868_v15 }
 0x27a   : > { %2101 = vrot.lane.b32.xlu0 %v4445_v27, %s3999_s27  ;;  %3190 = vrot.lane.b32.xlu1 %v4433_v22, %s4008_s11 }
 0x27c   : > { %v3187_v63 = vpop.permute.xlu1 %3186  ;;  %v1979_v23 = vpop.permute.xlu0 %1978 }
 0x27d   : > { %3209 = vst.msk [vmem:[%s4301_s26 + $0x1c] sm:$0x1] %vm1767_vm12, %v3187_v63  ;;  %2000 = vst.msk [vmem:[%s4301_s26 + $0x22] sm:$0x1] %vm1767_vm12, %v1979_v23 }
 0x27e   : > { %2216 = vrot.lane.b32.xlu0 %v4445_v27, %s4000_s28  ;;  %3194 = vrot.lane.b32.xlu1 %v4439_v25, %s4008_s11 }
 0x280   : > { %v3302_v18 = vpop.permute.xlu1 %3301  ;;  %v1983_v50 = vpop.permute.xlu0 %1982 }
 0x281   : > { %3324 = vst.msk [vmem:[%s4301_s26 + $0x1d] sm:$0x1] %vm1767_vm12, %v3302_v18  ;;  %2002 = vst.msk [vmem:[%s4301_s26 + $0x42] sm:$0x1] %vm1767_vm12, %v1983_v50 }
 0x282   : > { %2331 = vrot.lane.b32.xlu0 %v4445_v27, %s4001_s29  ;;  %3455 = vrot.lane.b32.xlu1 %v3400_v31, %s4010_s19 }
 0x284   : > { %v4765_v16 = vpop.permute.xlu1 %3451  ;;  %v2094_v51 = vpop.permute.xlu0 %2093 }
 0x285   : > { %2115 = vst.msk [vmem:[%s4301_s26 + $0x23] sm:$0x1] %vm1767_vm12, %v2094_v51 }
 0x286   : > { %2446 = vrot.lane.b32.xlu0 %v4445_v27, %s4002_s30  ;;  %3459 = vrot.lane.b32.xlu1 %v3408_v33, %s4010_s19 }
 0x288   : > { %v4775_v20 = vpop.permute.xlu1 %3467  ;;  %v2098_v45 = vpop.permute.xlu0 %2097 }
 0x289   : > { %2117 = vst.msk [vmem:[%s4301_s26 + $0x43] sm:$0x1] %vm1767_vm12, %v2098_v45 }
 0x28a   : > { %2588 = vrot.lane.b32.xlu0 %v2531_v30, %s4006_s9  ;;  %3471 = vrot.lane.b32.xlu1 %v3432_v37, %s4010_s19 }
 0x28c   : > { %v1866_v27 = vpop.permute.xlu1 %1865  ;;  %v2209_v31 = vpop.permute.xlu0 %2208 }
 0x28d   : > { %1886 = vst.msk [vmem:[%s4301_s26 + $0x31] sm:$0x1] %vm1767_vm12, %v1866_v27  ;;  %2230 = vst.msk [vmem:[%s4301_s26 + $0x24] sm:$0x1] %vm1767_vm12, %v2209_v31 }
 0x28e   : > { %2592 = vrot.lane.b32.xlu0 %v2539_v34, %s4006_s9  ;;  %3475 = vrot.lane.b32.xlu1 %v3440_v38, %s4010_s19 }
 0x290   : > { %v2213_v0 = vpop.permute.xlu0 %2212  ;;  %v1870_v30 = vpop.permute.xlu1 %1869 }
 0x291   : > { %2232 = vst.msk [vmem:[%s4301_s26 + $0x44] sm:$0x1] %vm1767_vm12, %v2213_v0  ;;  %1888 = vst.msk [vmem:[%s4301_s26 + $0x51] sm:$0x1] %vm1767_vm12, %v1870_v30 }
 0x292   : > { %2604 = vrot.lane.b32.xlu0 %v2563_v36, %s4006_s9  ;;  %3305 = vrot.lane.b32.xlu1 %v4433_v22, %s4009_s17 }
 0x294   : > { %v2324_v14 = vpop.permute.xlu0 %2323  ;;  %v1981_v33 = vpop.permute.xlu1 %1980 }
 0x295   : > { %2345 = vst.msk [vmem:[%s4301_s26 + $0x25] sm:$0x1] %vm1767_vm12, %v2324_v14  ;;  %2001 = vst.msk [vmem:[%s4301_s26 + $0x32] sm:$0x1] %vm1767_vm12, %v1981_v33 }
 0x296   : > { %2608 = vrot.lane.b32.xlu0 %v2571_v48, %s4006_s9  ;;  %3309 = vrot.lane.b32.xlu1 %v4439_v25, %s4009_s17 }
 0x298   : > { %v2328_v17 = vpop.permute.xlu0 %2327  ;;  %v1985_v34 = vpop.permute.xlu1 %1984 }
 0x299   : > { %2347 = vst.msk [vmem:[%s4301_s26 + $0x45] sm:$0x1] %vm1767_vm12, %v2328_v17  ;;  %2003 = vst.msk [vmem:[%s4301_s26 + $0x52] sm:$0x1] %vm1767_vm12, %v1985_v34 }
 0x29a   : > { %2736 = vrot.lane.b32.xlu0 %v4484_v39, %s4003_s5  ;;  %1873 = vrot.lane.b32.xlu1 %v4488_v40, %s3990_s4  ;;  %s3760_s4 = sshll.u32 %s4055_s16, 11 }
 0x29c   : > { %v2439_v22 = vpop.permute.xlu0 %2438  ;;  %v2096_v19 = vpop.permute.xlu1 %2095 }
 0x29d   : > { %2460 = vst.msk [vmem:[%s4301_s26 + $0x26] sm:$0x1] %vm1767_vm12, %v2439_v22  ;;  %2116 = vst.msk [vmem:[%s4301_s26 + $0x33] sm:$0x1] %vm1767_vm12, %v2096_v19 }
 0x29e   : > { %2851 = vrot.lane.b32.xlu0 %v4484_v39, %s4004_s6  ;;  %1988 = vrot.lane.b32.xlu1 %v4488_v40, %s3993_s7  ;;  %s3634_s7 = sshll.u32 %s4301_s26, 4  ;;  %s5100_s7 = int_to_ptr.vmem [resolvable:$true] %s3634_s7 }
 0x29f   : > { %s3922_s16 = scalar_lea.vmem %s5100_s7, 2048 }
 0x2a0   : > { %v2443_v25 = vpop.permute.xlu0 %2442  ;;  %v2100_v36 = vpop.permute.xlu1 %2099  ;;  %p3923_p11 = scmp.ne.s32.totalorder %s5100_s7, %s3922_s16 }
 0x2a1   : > { %2462 = vst.msk [vmem:[%s4301_s26 + $0x46] sm:$0x1] %vm1767_vm12, %v2443_v25  ;;  %2118 = vst.msk [vmem:[%s4301_s26 + $0x53] sm:$0x1] %vm1767_vm12, %v2100_v36 }
 0x2a2   : > { %2966 = vrot.lane.b32.xlu0 %v4484_v39, %s4005_s8  ;;  %2103 = vrot.lane.b32.xlu1 %v4488_v40, %s3999_s27  ;;  %s5098_s27 = scalar_lea.hbm %s5150_s3, %s3760_s4  ;;  %p3924_p12 = pnand %p3923_p11, %p4072_p5 }
 0x2a4   : > { %v2585_v37 = vpop.permute.xlu0 %2584  ;;  %v2211_v48 = vpop.permute.xlu1 %2210  ;;  %p3925_p13 = pneg %p3924_p12 }
 0x2a5   : > { %v2617_v38 = vsel %vm2616_vm13, %v2585_v37, %v4697_v3  ;;  %2231 = vst.msk [vmem:[%s4301_s26 + $0x34] sm:$0x1] %vm1767_vm12, %v2211_v48 }
 0x2a6   : > { %2633 = vst.msk [vmem:[%s4301_s26 + $0x7] sm:$0x1] %vm1767_vm12, %v2617_v38  ;;  %3081 = vrot.lane.b32.xlu0 %v4484_v39, %s4007_s10  ;;  %2218 = vrot.lane.b32.xlu1 %v4488_v40, %s4000_s28  ;;  %s5106_s28 = scalar_lea.sflag [#allocation4], %s161_s24 }
 0x2a8   : > { %v2601_v21 = vpop.permute.xlu0 %2600  ;;  %v2215_v46 = vpop.permute.xlu1 %2214 }
 0x2a9   : > { %v2621_v56 = vsel %vm2616_vm13, %v2601_v21, %v4707_v24  ;;  %2233 = vst.msk [vmem:[%s4301_s26 + $0x54] sm:$0x1] %vm1767_vm12, %v2215_v46 }
 0x2aa   : > { %2637 = vst.msk [vmem:[%s4301_s26 + $0x47] sm:$0x1] %vm1767_vm12, %v2621_v56  ;;  %3196 = vrot.lane.b32.xlu0 %v4484_v39, %s4008_s11  ;;  %2333 = vrot.lane.b32.xlu1 %v4488_v40, %s4001_s29  ;;  %s4011_s29 = smov [#allocation3]  }
 0x2ac   : > { %v2729_v3 = vpop.permute.xlu0 %2728  ;;  %v2326_v61 = vpop.permute.xlu1 %2325 }
 0x2ad   : > { %2750 = vst.msk [vmem:[%s4301_s26 + $0x28] sm:$0x1] %vm1767_vm12, %v2729_v3  ;;  %2346 = vst.msk [vmem:[%s4301_s26 + $0x35] sm:$0x1] %vm1767_vm12, %v2326_v61 }
 0x2ae   : > { %3453 = vrot.lane.b32.xlu0 %v3396_v41, %s4010_s19  ;;  %2448 = vrot.lane.b32.xlu1 %v4488_v40, %s4002_s30  ;;  %s3926_s30 = sshll.u32 %s4011_s29, 4  ;;  %s3927_s30 = int_to_ptr.vmem [resolvable:$false] %s3926_s30 }
 0x2af   : > { %p3929_p0 = scmp.lt.s32.totalorder %s5100_s7, %s3927_s30 }
 0x2b0   : > { %v2733_v24 = vpop.permute.xlu0 %2732  ;;  %v2330_v2 = vpop.permute.xlu1 %2329 }
 0x2b1   : > { %2752 = vst.msk [vmem:[%s4301_s26 + $0x48] sm:$0x1] %vm1767_vm12, %v2733_v24  ;;  %2348 = vst.msk [vmem:[%s4301_s26 + $0x55] sm:$0x1] %vm1767_vm12, %v2330_v2 }
 0x2b2   : > { %3457 = vrot.lane.b32.xlu0 %v3404_v47, %s4010_s19  ;;  %2598 = vrot.lane.b32.xlu1 %v2551_v57, %s4006_s9 }
 0x2b4   : > { %v2844_v28 = vpop.permute.xlu0 %2843  ;;  %v2441_v40 = vpop.permute.xlu1 %2440 }
 0x2b5   : > { %2865 = vst.msk [vmem:[%s4301_s26 + $0x29] sm:$0x1] %vm1767_vm12, %v2844_v28  ;;  %2461 = vst.msk [vmem:[%s4301_s26 + $0x36] sm:$0x1] %vm1767_vm12, %v2441_v40 }
 0x2b6   : > { %3469 = vrot.lane.b32.xlu0 %v3428_v43, %s4010_s19  ;;  %2614 = vrot.lane.b32.xlu1 %v2583_v59, %s4006_s9 }
 0x2b8   : > { %v2848_v29 = vpop.permute.xlu0 %2847  ;;  %v2445_v41 = vpop.permute.xlu1 %2444 }
 0x2b9   : > { %2867 = vst.msk [vmem:[%s4301_s26 + $0x49] sm:$0x1] %vm1767_vm12, %v2848_v29  ;;  %2463 = vst.msk [vmem:[%s4301_s26 + $0x56] sm:$0x1] %vm1767_vm12, %v2445_v41 }
 0x2ba   : > { %3473 = vrot.lane.b32.xlu0 %v3436_v55, %s4010_s19  ;;  %2738 = vrot.lane.b32.xlu1 %v4523_v52, %s4003_s5  ;;  %s3928_s5 = scalar_lea.vmem %s3927_s30, 4096 }
 0x2bb   : > { %p3930_p1 = scmp.lt.s32.totalorder %s3928_s5, %s3922_s16 }
 0x2bc   : > { %v2959_v32 = vpop.permute.xlu0 %2958  ;;  %v4907_v47 = vpop.permute.xlu1 %2590 }
 0x2bd   : > { %2980 = vst.msk [vmem:[%s4301_s26 + $0x2a] sm:$0x1] %vm1767_vm12, %v2959_v32  ;;  %p3931_p2 = por %p3930_p1, %p3929_p0 }
 0x2be   : > { %3311 = vrot.lane.b32.xlu0 %v4484_v39, %s4009_s17  ;;  %2853 = vrot.lane.b32.xlu1 %v4523_v52, %s4004_s6 }
 0x2bf   : > { %p3932_p3 = pnand %p3931_p2, %p3925_p13 }
 0x2c0   : > { %v2963_v43 = vpop.permute.xlu0 %2962  ;;  %v4915_v57 = vpop.permute.xlu1 %2594 }
 0x2c1   : > { %2982 = vst.msk [vmem:[%s4301_s26 + $0x4a] sm:$0x1] %vm1767_vm12, %v2963_v43 }
 0x2c2   : > { %2596 = vrot.lane.b32.xlu0 %v2547_v62, %s4006_s9  ;;  %2968 = vrot.lane.b32.xlu1 %v4523_v52, %s4005_s8 }
 0x2c4   : > { %v3074_v35 = vpop.permute.xlu0 %3073  ;;  %v4925_v39 = vpop.permute.xlu1 %2606 }
 0x2c5   : > { %3095 = vst.msk [vmem:[%s4301_s26 + $0x2b] sm:$0x1] %vm1767_vm12, %v3074_v35 }
 0x2c6   : > { %2612 = vrot.lane.b32.xlu0 %v2579_v1, %s4006_s9  ;;  %3083 = vrot.lane.b32.xlu1 %v4523_v52, %s4007_s10 }
 0x2c8   : > { %v3078_v49 = vpop.permute.xlu0 %3077  ;;  %v4935_v55 = vpop.permute.xlu1 %2610 }
 0x2c9   : > { %3097 = vst.msk [vmem:[%s4301_s26 + $0x4b] sm:$0x1] %vm1767_vm12, %v3078_v49 }
 0x2ca   : > { %3461 = vrot.lane.b32.xlu0 %v3412_v7, %s4010_s19  ;;  %3198 = vrot.lane.b32.xlu1 %v4523_v52, %s4008_s11 }
 0x2cc   : > { %v3189_v54 = vpop.permute.xlu0 %3188  ;;  %v2731_v59 = vpop.permute.xlu1 %2730 }
 0x2cd   : > { %3210 = vst.msk [vmem:[%s4301_s26 + $0x2c] sm:$0x1] %vm1767_vm12, %v3189_v54  ;;  %2751 = vst.msk [vmem:[%s4301_s26 + $0x38] sm:$0x1] %vm1767_vm12, %v2731_v59 }
 0x2ce   : > { %3477 = vrot.lane.b32.xlu0 %v3444_v10, %s4010_s19  ;;  %3463 = vrot.lane.b32.xlu1 %v3416_v9, %s4010_s19 }
 0x2d0   : > { %v3193_v62 = vpop.permute.xlu0 %3192  ;;  %v2735_v1 = vpop.permute.xlu1 %2734 }
 0x2d1   : > { %3212 = vst.msk [vmem:[%s4301_s26 + $0x4c] sm:$0x1] %vm1767_vm12, %v3193_v62  ;;  %2753 = vst.msk [vmem:[%s4301_s26 + $0x58] sm:$0x1] %vm1767_vm12, %v2735_v1 }
 0x2d2   : > { %3600 = vrot.lane.b32.xlu0 %v4265_v8, %s3998_s20  ;;  %3479 = vrot.lane.b32.xlu1 %v3448_v11, %s4010_s19 }
 0x2d4   : > { %v3450_v53 = vpop.permute.xlu0 %3449  ;;  %v2846_v44 = vpop.permute.xlu1 %2845 }
 0x2d5   : > { %v3481_v7 = vsel %vm186_vm3, %v3450_v53, %v4765_v16  ;;  %2866 = vst.msk [vmem:[%s4301_s26 + $0x39] sm:$0x1] %vm1767_vm12, %v2846_v44 }
 0x2d6   : > { %3497 = vst.msk [vmem:[%s4301_s26 + $0xe] sm:$0x1] %vm1767_vm12, %v3481_v7  ;;  %3313 = vrot.lane.b32.xlu1 %v4523_v52, %s4009_s17 }
 0x2d8   : > { %v3466_v8 = vpop.permute.xlu0 %3465  ;;  %v2850_v42 = vpop.permute.xlu1 %2849 }
 0x2d9   : > { %v3485_v5 = vsel %vm186_vm3, %v3466_v8, %v4775_v20  ;;  %2868 = vst.msk [vmem:[%s4301_s26 + $0x59] sm:$0x1] %vm1767_vm12, %v2850_v42 }
 0x2da   : > { %3501 = vst.msk [vmem:[%s4301_s26 + $0x4e] sm:$0x1] %vm1767_vm12, %v3485_v5  ;;  %3602 = vrot.lane.b32.xlu1 %v4271_v13, %s3998_s20 }
 0x2dc   : > { %v3304_v9 = vpop.permute.xlu0 %3303  ;;  %v2961_v10 = vpop.permute.xlu1 %2960 }
 0x2dd   : > { %3325 = vst.msk [vmem:[%s4301_s26 + $0x2d] sm:$0x1] %vm1767_vm12, %v3304_v9  ;;  %2981 = vst.msk [vmem:[%s4301_s26 + $0x3a] sm:$0x1] %vm1767_vm12, %v2961_v10 }
 0x2e0   : > { %v3308_v52 = vpop.permute.xlu0 %3307  ;;  %v2965_v11 = vpop.permute.xlu1 %2964 }
 0x2e1   : > { %3327 = vst.msk [vmem:[%s4301_s26 + $0x4d] sm:$0x1] %vm1767_vm12, %v3308_v52  ;;  %2983 = vst.msk [vmem:[%s4301_s26 + $0x5a] sm:$0x1] %vm1767_vm12, %v2965_v11 }
 0x2e4   : > { %v1872_v4 = vpop.permute.xlu0 %1871  ;;  %v3076_v6 = vpop.permute.xlu1 %3075 }
 0x2e5   : > { %1889 = vst.msk [vmem:[%s4301_s26 + $0x61] sm:$0x1] %vm1767_vm12, %v1872_v4  ;;  %3096 = vst.msk [vmem:[%s4301_s26 + $0x3b] sm:$0x1] %vm1767_vm12, %v3076_v6 }
 0x2e8   : > { %v1987_v13 = vpop.permute.xlu0 %1986  ;;  %v3080_v26 = vpop.permute.xlu1 %3079 }
 0x2e9   : > { %2004 = vst.msk [vmem:[%s4301_s26 + $0x62] sm:$0x1] %vm1767_vm12, %v1987_v13  ;;  %3098 = vst.msk [vmem:[%s4301_s26 + $0x5b] sm:$0x1] %vm1767_vm12, %v3080_v26 }
 0x2ec   : > { %v2102_v12 = vpop.permute.xlu0 %2101  ;;  %v3191_v58 = vpop.permute.xlu1 %3190 }
 0x2ed   : > { %2119 = vst.msk [vmem:[%s4301_s26 + $0x63] sm:$0x1] %vm1767_vm12, %v2102_v12  ;;  %3211 = vst.msk [vmem:[%s4301_s26 + $0x3c] sm:$0x1] %vm1767_vm12, %v3191_v58 }
 0x2f0   : > { %v2217_v60 = vpop.permute.xlu0 %2216  ;;  %v3195_v15 = vpop.permute.xlu1 %3194 }
 0x2f1   : > { %2234 = vst.msk [vmem:[%s4301_s26 + $0x64] sm:$0x1] %vm1767_vm12, %v2217_v60  ;;  %3213 = vst.msk [vmem:[%s4301_s26 + $0x5c] sm:$0x1] %vm1767_vm12, %v3195_v15 }
 0x2f4   : > { %v2332_v63 = vpop.permute.xlu0 %2331  ;;  %v3456_v23 = vpop.permute.xlu1 %3455 }
 0x2f5   : > { %2349 = vst.msk [vmem:[%s4301_s26 + $0x65] sm:$0x1] %vm1767_vm12, %v2332_v63 }
 0x2f8   : > { %v2447_v18 = vpop.permute.xlu0 %2446  ;;  %v3460_v50 = vpop.permute.xlu1 %3459 }
 0x2f9   : > { %2464 = vst.msk [vmem:[%s4301_s26 + $0x66] sm:$0x1] %vm1767_vm12, %v2447_v18 }
 0x2fc   : > { %v2589_v16 = vpop.permute.xlu0 %2588  ;;  %v3472_v51 = vpop.permute.xlu1 %3471 }
 0x2fd   : > { %v2618_v20 = vsel %vm2616_vm13, %v2589_v16, %v4907_v47 }
 0x2fe   : > { %2634 = vst.msk [vmem:[%s4301_s26 + $0x17] sm:$0x1] %vm1767_vm12, %v2618_v20 }
 0x300   : > { %v2593_v45 = vpop.permute.xlu0 %2592  ;;  %v3476_v27 = vpop.permute.xlu1 %3475 }
 0x301   : > { %v2619_v31 = vsel %vm2616_vm13, %v2593_v45, %v4915_v57 }
 0x302   : > { %2635 = vst.msk [vmem:[%s4301_s26 + $0x27] sm:$0x1] %vm1767_vm12, %v2619_v31 }
 0x304   : > { %v2605_v0 = vpop.permute.xlu0 %2604  ;;  %v3306_v30 = vpop.permute.xlu1 %3305 }
 0x305   : > { %v2622_v14 = vsel %vm2616_vm13, %v2605_v0, %v4925_v39  ;;  %3326 = vst.msk [vmem:[%s4301_s26 + $0x3d] sm:$0x1] %vm1767_vm12, %v3306_v30 }
 0x306   : > { %2638 = vst.msk [vmem:[%s4301_s26 + $0x57] sm:$0x1] %vm1767_vm12, %v2622_v14 }
 0x308   : > { %v2609_v33 = vpop.permute.xlu0 %2608  ;;  %v3310_v17 = vpop.permute.xlu1 %3309 }
 0x309   : > { %v2623_v34 = vsel %vm2616_vm13, %v2609_v33, %v4935_v55  ;;  %3328 = vst.msk [vmem:[%s4301_s26 + $0x5d] sm:$0x1] %vm1767_vm12, %v3310_v17 }
 0x30a   : > { %2639 = vst.msk [vmem:[%s4301_s26 + $0x67] sm:$0x1] %vm1767_vm12, %v2623_v34 }
 0x30c   : > { %v2737_v22 = vpop.permute.xlu0 %2736  ;;  %v1874_v19 = vpop.permute.xlu1 %1873 }
 0x30d   : > { %2754 = vst.msk [vmem:[%s4301_s26 + $0x68] sm:$0x1] %vm1767_vm12, %v2737_v22  ;;  %1890 = vst.msk [vmem:[%s4301_s26 + $0x71] sm:$0x1] %vm1767_vm12, %v1874_v19 }
 0x310   : > { %v2852_v25 = vpop.permute.xlu0 %2851  ;;  %v1989_v36 = vpop.permute.xlu1 %1988 }
 0x311   : > { %2869 = vst.msk [vmem:[%s4301_s26 + $0x69] sm:$0x1] %vm1767_vm12, %v2852_v25  ;;  %2005 = vst.msk [vmem:[%s4301_s26 + $0x72] sm:$0x1] %vm1767_vm12, %v1989_v36 }
 0x314   : > { %v2967_v37 = vpop.permute.xlu0 %2966  ;;  %v2104_v48 = vpop.permute.xlu1 %2103 }
 0x315   : > { %2984 = vst.msk [vmem:[%s4301_s26 + $0x6a] sm:$0x1] %vm1767_vm12, %v2967_v37  ;;  %2120 = vst.msk [vmem:[%s4301_s26 + $0x73] sm:$0x1] %vm1767_vm12, %v2104_v48 }
 0x318   : > { %v3082_v38 = vpop.permute.xlu0 %3081  ;;  %v2219_v21 = vpop.permute.xlu1 %2218 }
 0x319   : > { %3099 = vst.msk [vmem:[%s4301_s26 + $0x6b] sm:$0x1] %vm1767_vm12, %v3082_v38  ;;  %2235 = vst.msk [vmem:[%s4301_s26 + $0x74] sm:$0x1] %vm1767_vm12, %v2219_v21 }
 0x31c   : > { %v3197_v46 = vpop.permute.xlu0 %3196  ;;  %v2334_v56 = vpop.permute.xlu1 %2333 }
 0x31d   : > { %3214 = vst.msk [vmem:[%s4301_s26 + $0x6c] sm:$0x1] %vm1767_vm12, %v3197_v46  ;;  %2350 = vst.msk [vmem:[%s4301_s26 + $0x75] sm:$0x1] %vm1767_vm12, %v2334_v56 }
 0x320   : > { %v3454_v3 = vpop.permute.xlu0 %3453  ;;  %v2449_v61 = vpop.permute.xlu1 %2448 }
 0x321   : > { %v3482_v24 = vsel %vm186_vm3, %v3454_v3, %v3456_v23  ;;  %2465 = vst.msk [vmem:[%s4301_s26 + $0x76] sm:$0x1] %vm1767_vm12, %v2449_v61 }
 0x322   : > { %3498 = vst.msk [vmem:[%s4301_s26 + $0x1e] sm:$0x1] %vm1767_vm12, %v3482_v24 }
 0x324   : > { %v3458_v2 = vpop.permute.xlu0 %3457  ;;  %v2599_v28 = vpop.permute.xlu1 %2598 }
 0x325   : > { %v3483_v40 = vsel %vm186_vm3, %v3458_v2, %v3460_v50 }
 0x326   : > { %3499 = vst.msk [vmem:[%s4301_s26 + $0x2e] sm:$0x1] %vm1767_vm12, %v3483_v40 }
 0x328   : > { %v3470_v29 = vpop.permute.xlu0 %3469  ;;  %v2615_v41 = vpop.permute.xlu1 %2614 }
 0x329   : > { %v3486_v32 = vsel %vm186_vm3, %v3470_v29, %v3472_v51 }
 0x32a   : > { %3502 = vst.msk [vmem:[%s4301_s26 + $0x5e] sm:$0x1] %vm1767_vm12, %v3486_v32 }
 0x32c   : > { %v3474_v47 = vpop.permute.xlu0 %3473  ;;  %v2739_v43 = vpop.permute.xlu1 %2738 }
 0x32d   : > { %v3487_v57 = vsel %vm186_vm3, %v3474_v47, %v3476_v27  ;;  %2755 = vst.msk [vmem:[%s4301_s26 + $0x78] sm:$0x1] %vm1767_vm12, %v2739_v43 }
 0x32e   : > { %3503 = vst.msk [vmem:[%s4301_s26 + $0x6e] sm:$0x1] %vm1767_vm12, %v3487_v57 }
 0x330   : > { %v3312_v35 = vpop.permute.xlu0 %3311  ;;  %v2854_v39 = vpop.permute.xlu1 %2853 }
 0x331   : > { %3329 = vst.msk [vmem:[%s4301_s26 + $0x6d] sm:$0x1] %vm1767_vm12, %v3312_v35  ;;  %2870 = vst.msk [vmem:[%s4301_s26 + $0x79] sm:$0x1] %vm1767_vm12, %v2854_v39 }
 0x334   : > { %v2597_v49 = vpop.permute.xlu0 %2596  ;;  %v2969_v55 = vpop.permute.xlu1 %2968 }
 0x335   : > { %v2620_v54 = vsel %vm2616_vm13, %v2597_v49, %v2599_v28  ;;  %2985 = vst.msk [vmem:[%s4301_s26 + $0x7a] sm:$0x1] %vm1767_vm12, %v2969_v55 }
 0x336   : > { %2636 = vst.msk [vmem:[%s4301_s26 + $0x37] sm:$0x1] %vm1767_vm12, %v2620_v54 }
 0x338   : > { %v2613_v59 = vpop.permute.xlu0 %2612  ;;  %v3084_v62 = vpop.permute.xlu1 %3083 }
 0x339   : > { %v2624_v1 = vsel %vm2616_vm13, %v2613_v59, %v2615_v41  ;;  %3100 = vst.msk [vmem:[%s4301_s26 + $0x7b] sm:$0x1] %vm1767_vm12, %v3084_v62 }
 0x33a   : > { %2640 = vst.msk [vmem:[%s4301_s26 + $0x77] sm:$0x1] %vm1767_vm12, %v2624_v1 }
 0x33c   : > { %v3462_v53 = vpop.permute.xlu0 %3461  ;;  %v3199_v44 = vpop.permute.xlu1 %3198 }
 0x33d   : > { %3215 = vst.msk [vmem:[%s4301_s26 + $0x7c] sm:$0x1] %vm1767_vm12, %v3199_v44 }
 0x340   : > { %v3478_v7 = vpop.permute.xlu0 %3477  ;;  %v3464_v8 = vpop.permute.xlu1 %3463 }
 0x341   : > { %v3484_v42 = vsel %vm186_vm3, %v3462_v53, %v3464_v8 }
 0x342   : > { %3500 = vst.msk [vmem:[%s4301_s26 + $0x3e] sm:$0x1] %vm1767_vm12, %v3484_v42 }
 0x344   : > { %v3601_v5 = vpop.permute.xlu0 %3600  ;;  %v3480_v9 = vpop.permute.xlu1 %3479 }
 0x345   : > { %3618 = vst.msk [vmem:[%s4301_s26 + $0x6f] sm:$0x1] %vm1767_vm12, %v3601_v5  ;;  %v3488_v10 = vsel %vm186_vm3, %v3478_v7, %v3480_v9 }
 0x346   : > { %3504 = vst.msk [vmem:[%s4301_s26 + $0x7e] sm:$0x1] %vm1767_vm12, %v3488_v10 }
 0x348   : > { %v3314_v52 = vpop.permute.xlu1 %3313 }
 0x349   : > { %3330 = vst.msk [vmem:[%s4301_s26 + $0x7d] sm:$0x1] %vm1767_vm12, %v3314_v52 }
 0x34c   : > { %v3603_v11 = vpop.permute.xlu1 %3602 }
 0x34d   : > { %3619 = vst.msk [vmem:[%s4301_s26 + $0x7f] sm:$0x1] %vm1767_vm12, %v3603_v11 }
 0x34e   : > { %3935 = shalt.err (!%p3932_p3)
}
 0x34f   : > { %s3936_s24 = scalar_lea.hbm %s5098_s27, 2048  ;;  %s3940_s8 = scalar_lea.hbm %s5150_s3, 4096 }
 0x350   : > { %p3937_p4 = scmp.ne.s32.totalorder %s5098_s27, %s3936_s24  ;;  %p3941_p9 = scmp.lt.u32.totalorder %s5098_s27, %s5150_s3 }
 0x351   : > { %p3942_p10 = scmp.lt.u32.totalorder %s3940_s8, %s3936_s24  ;;  %p3944_p12 = scmp.lt.u32.totalorder %s3936_s24, %s5098_s27 }
 0x352   : > { %p3938_p7 = pnand %p3937_p4, %p4072_p5 }
 0x353   : > { %p3943_p11 = por %p3942_p10, %p3941_p9 }
 0x354   : > { %p3939_p8 = pneg %p3938_p7 }
 0x355   : > { %p3945_p13 = por %p3944_p12, %p3943_p11 }
 0x357   : > { %p3946_p0 = pnand %p3945_p13, %p3939_p8 }
 0x359   : > { %3949 = shalt.err (!%p3946_p0)
}
 0x35a   : > { %s4012_s11 = smov 128   ;;  %s4013_s17 = smov 8  }
 0x35b   : > { %3841 = dma.vmem_to_hbm [thread:$0]  (%p4072_p5), %s5100_s7, 2048, %s5098_s27, %s5106_s28, %s4012_s11, %s4012_s11, %s4013_s17  }
 0x35c PF: > { %p3847_p1 = scmp.ge.s32.totalorder %s3984_s15, 2  ;;  %s3649_s19 = sand.u32 1, %s3972_s12  }
 0x35d   : > { %s3650_s4 = scalar_lea.sflag [#allocation4], %s3649_s19 }
 0x35e   : > { %p3844_p2 = pnand %p3847_p1, %p4076_p6 }
 0x360   : > { %3967 = dma.done.wait (!%p3844_p2), %s3650_s4, 2048  }
 0x361   : > { %3969 = vsyncadd (!%p3844_p2), %s3650_s4, 4294965248  ;;  %p13_p3 = scmp.ge.s32.totalorder %s4059_s18, 4   ;;  %s5153_s12 = smov %s3976_s13 }
 0x362   : > { %s5154_s13 = smov %s3980_s14  ;;  %s5155_s14 = smov %s4070_s21 }
 0x363   : > { %s5156_s15 = smov %s4059_s18  ;;  %15 = sbr.rel (!%p13_p3) target bundleno = 3 (0x3), region = 75 }
 0x36a   :  { %3655 = vsyncpa [#allocation4], 1 }
 0x36b   :  { %3657 = vsyncpa [#allocation4 + $0x1], 1 }

</bundles_post_ra>
